<compile_context>
chip_gen: v7x
topology: tpu7x:2x2x1
jax: 0.10.0
libtpu: 0.0.40
codegen_flags: <defaults>
</compile_context>

<pallas_src>
import numpy as np
import jax
import jax.numpy as jnp
from jax.experimental import pallas as pl
from jax.experimental.pallas import tpu as pltpu


def _round_up(x, m):
    return ((x + m - 1) // m) * m


# ----------------------------------------------------------------------------
# librosa_mel_fn replacement (Slaney mel scale, slaney norm) -- deterministic.
# ----------------------------------------------------------------------------
def _hz_to_mel(f):
    f = np.asarray(f, dtype=np.float64)
    f_sp = 200.0 / 3.0
    mels = f / f_sp
    min_log_hz = 1000.0
    min_log_mel = min_log_hz / f_sp
    logstep = np.log(6.4) / 27.0
    log_region = f >= min_log_hz
    mels = np.where(log_region,
                    min_log_mel + np.log(np.maximum(f, min_log_hz) / min_log_hz) / logstep,
                    mels)
    return mels


def _mel_to_hz(m):
    m = np.asarray(m, dtype=np.float64)
    f_sp = 200.0 / 3.0
    freqs = f_sp * m
    min_log_hz = 1000.0
    min_log_mel = min_log_hz / f_sp
    logstep = np.log(6.4) / 27.0
    log_region = m >= min_log_mel
    freqs = np.where(log_region,
                     min_log_hz * np.exp(logstep * (m - min_log_mel)),
                     freqs)
    return freqs


def librosa_mel_fn(sr, n_fft, n_mels, fmin, fmax):
    n_freq = n_fft // 2 + 1
    fftfreqs = np.linspace(0.0, sr / 2.0, n_freq)
    mel_pts = np.linspace(_hz_to_mel(fmin), _hz_to_mel(fmax), n_mels + 2)
    mel_f = _mel_to_hz(mel_pts)

    fdiff = np.diff(mel_f)
    ramps = mel_f[:, None] - fftfreqs[None, :]

    weights = np.zeros((n_mels, n_freq), dtype=np.float64)
    for i in range(n_mels):
        lower = -ramps[i] / fdiff[i]
        upper = ramps[i + 2] / fdiff[i + 1]
        weights[i] = np.maximum(0.0, np.minimum(lower, upper))

    # Slaney normalization
    enorm = 2.0 / (mel_f[2:n_mels + 2] - mel_f[:n_mels])
    weights *= enorm[:, None]
    return weights.astype(np.float32)


# ----------------------------------------------------------------------------
# Pallas kernel: fused (windowed-DFT -> magnitude -> mel -> log) per (b, T-tile)
# ----------------------------------------------------------------------------
def _mel_kernel(frames_ref, basis_ref, melb_ref, out_ref):
    # frames_ref: (1, K_pad, tT)       bf16  overlapping analysis windows
    # basis_ref : (2*F_pad, K_pad)     bf16  rows [0,F_pad)=win*cos, rest=-win*sin
    # melb_ref  : (n_mels_pad, F_pad)  bf16  zero-padded mel filterbank
    # out_ref   : (1, n_mels_pad, tT)  f32   log-mel, lane-dense (tT multiple of 128)
    f_pad = melb_ref.shape[1]
    f = frames_ref[0]                                                    # (K_pad, tT)

    # single wide MXU matmul produces real and imaginary parts together
    s = jnp.dot(basis_ref[...], f, preferred_element_type=jnp.float32)   # (2F_pad, tT)
    re = s[:f_pad]                          # sublane split; f_pad is a multiple of 8
    im = s[f_pad:]
    mag = jnp.sqrt(re * re + im * im + 1e-9)                             # (F_pad, tT)

    # The mel matmul is only ~2-4% of total FLOPs; mag is kept bf16 for
    # full-rate MXU issue (dropping the cast is roughly perf-neutral).
    mel = jnp.dot(melb_ref[...], mag.astype(jnp.bfloat16),
                  preferred_element_type=jnp.float32)                    # (n_mels_pad, tT)
    out_ref[0] = jnp.log(jnp.maximum(mel, 1e-5))                         # norm_fn = log


class MelConverter:
    """JAX/Pallas port of MMAudio MelConverter (norm_fn = log).

    block_t: frames per grid tile (output lane dim).  256 fills the 256-wide
    v6e/v7x MXU; 128 is already enough on v5e's 128-wide MXU.
    """

    def __init__(self, *, sampling_rate, n_fft, num_mels, hop_size, win_size,
                 fmin, fmax, block_t=256):
        self.sampling_rate = sampling_rate
        self.n_fft = n_fft
        self.num_mels = num_mels
        self.hop_size = hop_size
        self.win_size = win_size
        self.fmin = fmin
        self.fmax = fmax
        self.block_t = block_t

        self.n_freq = n_fft // 2 + 1
        self.F_pad = _round_up(self.n_freq, 8)      # sublane aligned (was 128)
        self.lpad = (n_fft - win_size) // 2         # window centering inside the frame
        self.K_pad = _round_up(win_size, 128)       # only windowed samples matter
        self.n_mels_pad = _round_up(num_mels, 8)

        # mel filterbank, zero-padded to (n_mels_pad, F_pad); bf16 for the MXU.
        mel = librosa_mel_fn(sr=sampling_rate, n_fft=n_fft, n_mels=num_mels,
                             fmin=fmin, fmax=fmax)                 # (n_mels, n_freq)
        melb = np.zeros((self.n_mels_pad, self.F_pad), np.float32)
        melb[:num_mels, :self.n_freq] = mel
        self.melb = jnp.asarray(melb, dtype=jnp.bfloat16)
        self.mel_f32 = jnp.asarray(mel)                            # for the reference

        # Fused windowed-DFT basis (periodic hann, matching torch.hann_window):
        #   rows [0, F_pad)      : hann[n] *  cos(2*pi*k*(lpad+n)/n_fft)
        #   rows [F_pad, 2F_pad) : hann[n] * -sin(2*pi*k*(lpad+n)/n_fft)
        # padded rows/cols are exactly zero (invariant relied on by the
        # framing padding below).
        n = np.arange(win_size)
        hann = 0.5 * (1.0 - np.cos(2.0 * np.pi * n / win_size))
        win = np.zeros(self.K_pad, np.float64)
        win[:win_size] = hann
        t_in_frame = self.lpad + np.arange(self.K_pad)             # (K_pad,)
        k = np.arange(self.F_pad)
        ang = 2.0 * np.pi * np.outer(k, t_in_frame) / n_fft        # (F_pad, K_pad)
        cos_b = win[None, :] * np.cos(ang)
        sin_b = win[None, :] * -np.sin(ang)
        cos_b[self.n_freq:] = 0.0
        sin_b[self.n_freq:] = 0.0
        basis = np.concatenate([cos_b, sin_b], axis=0).astype(np.float32)
        self.basis = jnp.asarray(basis, dtype=jnp.bfloat16)        # (2F_pad, K_pad)

    # ------------------------------------------------------------------ glue
    def _frame(self, waveform):
        """clamp -> reflect pad -> overlapping windows in (K, T) layout.

        Gather-free: the windows are assembled from ceil(K_pad/hop) shifted
        CONTIGUOUS chunk slices (+ transpose + concat), all in bf16.
        """
        wf = jnp.clip(waveform.astype(jnp.float32), -1.0, 1.0)
        p = (self.n_fft - self.hop_size) // 2
        padded = jnp.pad(wf, ((0, 0), (p, p)), mode="reflect")
        B, L = padded.shape
        hop = self.hop_size
        T = 1 + (L - self.n_fft) // hop
        T_pad = _round_up(max(T, 1), self.block_t)

        J = -(-self.K_pad // hop)                     # ceil(K_pad / hop)
        n_chunks = T_pad + J
        need = self.lpad + n_chunks * hop
        # Zero-extend so every window (incl. padded frames t >= T and padded
        # rows k >= win_size, which hit zero basis columns) stays in range;
        # the extra frames are sliced off after the kernel.
        if need > L:
            padded = jnp.pad(padded, ((0, 0), (0, need - L)))
        padded = padded.astype(jnp.bfloat16)          # bf16 BEFORE framing copies

        chunks = padded[:, self.lpad:self.lpad + n_chunks * hop]
        chunks = chunks.reshape(B, n_chunks, hop)     # [b, c, r] = padded[b, lpad + c*hop + r]
        # frames[b, j*hop + r, t] = padded[b, lpad + (t + j)*hop + r] = chunks[b, t + j, r]
        pieces = [jnp.swapaxes(chunks[:, j:j + T_pad, :], 1, 2) for j in range(J)]
        frames = jnp.concatenate(pieces, axis=1)[:, :self.K_pad, :]   # (B, K_pad, T_pad)
        return frames, T

    # --------------------------------------------------------------- forward
    def _pallas_forward(self, frames, resident_weights):
        B, K_pad, T_pad = frames.shape
        F_pad, n_mels_pad, tT = self.F_pad, self.n_mels_pad, self.block_t
        n_t_tiles = T_pad // tT

        if resident_weights:
            # Whole constant operands live in VMEM: one copy, single buffer
            # (no double-buffered weight blocks -> VMEM headroom on v7x).
            basis_spec = pl.BlockSpec(memory_space=pltpu.MemorySpace.VMEM)
            melb_spec = pl.BlockSpec(memory_space=pltpu.MemorySpace.VMEM)
            weight_buffers = 1
        else:
            # Fallback: constant block index -> DMA'd once, but double-buffered.
            basis_spec = pl.BlockSpec((2 * F_pad, K_pad), lambda b, t: (0, 0))
            melb_spec = pl.BlockSpec((n_mels_pad, F_pad), lambda b, t: (0, 0))
            weight_buffers = 2

        # VMEM budget derived from actual block / intermediate sizes.
        frames_blk = K_pad * tT * 2                                   # bf16
        out_blk = n_mels_pad * tT * 4                                 # f32
        weight_bytes = (2 * F_pad * K_pad + n_mels_pad * F_pad) * 2 * weight_buffers
        interm = (2 * F_pad + 3 * F_pad + n_mels_pad) * tT * 4        # s, re/im/mag, mel
        vmem_est = 2 * frames_blk + 2 * out_blk + weight_bytes + interm
        # floor 32 MiB (v5e's default scoped limit is 16 MiB), cap 48 MiB
        # (v7x has only 64 MiB physical VMEM; shrink block_t if ever capped).
        vmem_limit = int(min(48 * 2**20, max(32 * 2**20, 2 * vmem_est)))

        flops = (2 * B * T_pad * K_pad * (2 * F_pad)          # fused DFT matmul
                 + 2 * B * T_pad * F_pad * n_mels_pad          # mel matmul
                 + 5 * B * T_pad * F_pad)                      # magnitude elementwise
        transcendentals = B * T_pad * (F_pad + n_mels_pad)     # sqrt + log
        bytes_accessed = (frames.size * 2 + self.basis.size * 2 + self.melb.size * 2
                          + B * n_mels_pad * T_pad * 4)

        return pl.pallas_call(
            _mel_kernel,
            out_shape=jax.ShapeDtypeStruct((B, n_mels_pad, T_pad), jnp.float32),
            grid_spec=pltpu.PrefetchScalarGridSpec(
                num_scalar_prefetch=0,
                # Both axes parallel (megacore / v7x 2-TC sharding); keep
                # B * n_t_tiles >= 2 (ideally even) so no core sits idle.
                grid=(B, n_t_tiles),
                in_specs=[
                    pl.BlockSpec((1, K_pad, tT), lambda b, t: (b, 0, t)),
                    basis_spec,
                    melb_spec,
                ],
                out_specs=pl.BlockSpec((1, n_mels_pad, tT), lambda b, t: (b, 0, t)),
            ),
            compiler_params=pltpu.CompilerParams(
                dimension_semantics=("parallel", "parallel"),
                vmem_limit_bytes=vmem_limit,
            ),
            cost_estimate=pl.CostEstimate(
                flops=int(flops),
                transcendentals=int(transcendentals),
                bytes_accessed=int(bytes_accessed),
            ),
        )(frames, self.basis, self.melb)

    def __call__(self, waveform):
        frames, T = self._frame(waveform)
        try:
            out = self._pallas_forward(frames, resident_weights=True)
        except Exception:
            # Fallback for environments where whole-operand VMEM placement is
            # unsupported; semantics identical, weights merely double-buffered.
            out = self._pallas_forward(frames, resident_weights=False)
        # already (B, mel, frames): just slice off the zero padding
        return out[:, :self.num_mels, :T]


# ----------------------------------------------------------------------------
# References for self-check
# ----------------------------------------------------------------------------
def _reference_f32(conv: MelConverter, waveform):
    """Pure-JAX float32 reference with exact torch MelConverter semantics."""
    wf = jnp.clip(waveform.astype(jnp.float32), -1.0, 1.0)
    p = (conv.n_fft - conv.hop_size) // 2
    padded = jnp.pad(wf, ((0, 0), (p, p)), mode="reflect")
    L = padded.shape[1]
    T = 1 + (L - conv.n_fft) // conv.hop_size
    idx = (jnp.arange(T) * conv.hop_size)[:, None] + jnp.arange(conv.n_fft)[None, :]
    frames = padded[:, idx]                                           # (B, T, n_fft)

    n = np.arange(conv.win_size)
    hann = 0.5 * (1.0 - np.cos(2.0 * np.pi * n / conv.win_size))
    lp = (conv.n_fft - conv.win_size) // 2
    window = np.zeros(conv.n_fft, np.float64)
    window[lp:lp + conv.win_size] = hann
    k = np.arange(conv.n_fft // 2 + 1)
    ang = 2.0 * np.pi * np.outer(k, np.arange(conv.n_fft)) / conv.n_fft
    cosb = jnp.asarray((window[None, :] * np.cos(ang)).astype(np.float32))
    sinb = jnp.asarray((window[None, :] * -np.sin(ang)).astype(np.float32))

    re = jnp.einsum("btn,fn->bft", frames, cosb)
    im = jnp.einsum("btn,fn->bft", frames, sinb)
    mag = jnp.sqrt(re * re + im * im + 1e-9)
    mel = jnp.einsum("mf,bft->bmt", conv.mel_f32, mag)
    return jnp.log(jnp.maximum(mel, 1e-5))


def _reference_matched(conv: MelConverter, waveform):
    """Precision-matched reference (same bf16 matmul inputs as the kernel)."""
    frames, T = conv._frame(waveform)
    s = jnp.einsum("fk,bkt->bft", conv.basis, frames,
                   preferred_element_type=jnp.float32)
    F = conv.F_pad
    re, im = s[:, :F], s[:, F:]
    mag = jnp.sqrt(re * re + im * im + 1e-9)
    mel = jnp.einsum("mf,bft->bmt", conv.melb, mag.astype(jnp.bfloat16),
                     preferred_element_type=jnp.float32)
    out = jnp.log(jnp.maximum(mel, 1e-5))
    return out[:, :conv.num_mels, :T]


if __name__ == "__main__":
    # Small, self-consistent config.
    B = 2
    sampling_rate = 16000.0
    n_fft = 256
    hop_size = 64
    win_size = 256
    num_mels = 32
    fmin, fmax = 0.0, 8000.0
    n_samples = 16384  # -> T = 256 frames -> one 256-frame tile per batch

    conv = MelConverter(sampling_rate=sampling_rate, n_fft=n_fft,
                        num_mels=num_mels, hop_size=hop_size,
                        win_size=win_size, fmin=fmin, fmax=fmax,
                        block_t=256)

    key = jax.random.PRNGKey(0)
    waveform = jax.random.uniform(key, (B, n_samples),
                                  minval=-1.5, maxval=1.5,
                                  dtype=jnp.float32)  # exercises the clamp

    mel_spec = jax.block_until_ready(conv(waveform))
    assert mel_spec.shape == (B, num_mels, n_samples // hop_size)

    # precision-matched check (same bf16 inputs / f32 accumulation as kernel)
    ref_m = jax.block_until_ready(_reference_matched(conv, waveform))
    np.testing.assert_allclose(np.asarray(mel_spec), np.asarray(ref_m),
                               rtol=1e-3, atol=1e-3)

    # fidelity check vs. the full-float32 torch-semantics pipeline (bf16 matmul
    # inputs cost ~2-3 decimal digits before the log, hence the looser atol)
    ref_f = jax.block_until_ready(_reference_f32(conv, waveform))
    np.testing.assert_allclose(np.asarray(mel_spec), np.asarray(ref_f),
                               rtol=0.0, atol=0.1)

    print("KERNEL_OK")
</pallas_src>

<mosaic_0001>
module attributes {stable_mosaic.version = 11 : i64} {
  func.func @_mel_kernel(%arg0: i32, %arg1: i32, %arg2: memref<1x256x256xbf16, #tpu.memory_space<vmem>>, %arg3: memref<272x256xbf16, #tpu.memory_space<vmem>>, %arg4: memref<32x136xbf16, #tpu.memory_space<vmem>>, %arg5: memref<1x32x256xf32, #tpu.memory_space<vmem>>) attributes {dimension_semantics = [#tpu.dimension_semantics<parallel>, #tpu.dimension_semantics<parallel>], iteration_bounds = array<i64: 2, 1>, scalar_prefetch = 0 : i64, scratch_operands = 0 : i64, tpu.core_type = #tpu.core_type<tc>, window_params = [{transform_indices = @transform_0, window_bounds = array<i64: 1, 256, 256>}, {pipeline_mode = #tpu.pipeline_mode<synchronous>, transform_indices = @transform_1, window_bounds = array<i64: 272, 256>}, {pipeline_mode = #tpu.pipeline_mode<synchronous>, transform_indices = @transform_2, window_bounds = array<i64: 32, 136>}, {transform_indices = @transform_3, window_bounds = array<i64: 1, 32, 256>}]} {
    %c0 = arith.constant 0 : index
    %c0_0 = arith.constant 0 : index
    %c0_1 = arith.constant 0 : index
    %0 = vector.load %arg2[%c0, %c0_0, %c0_1] : memref<1x256x256xbf16, #tpu.memory_space<vmem>>, vector<1x256x256xbf16>
    %1 = vector.shape_cast %0 : vector<1x256x256xbf16> to vector<256x256xbf16>
    %c0_2 = arith.constant 0 : index
    %c0_3 = arith.constant 0 : index
    %2 = vector.load %arg3[%c0_2, %c0_3] : memref<272x256xbf16, #tpu.memory_space<vmem>>, vector<272x256xbf16>
    %cst = arith.constant dense<0.000000e+00> : vector<272x256xf32>
    %3 = tpu.matmul %2, %1, %cst {dimension_numbers = #tpu.dot_dimension_numbers<[1], [0], [0], [1], [0, 0, 1, 1], [], []>} : vector<272x256xbf16>, vector<256x256xbf16>, vector<272x256xf32> -> vector<272x256xf32>
    %4 = vector.extract_strided_slice %3 {offsets = [0, 0], sizes = [136, 256], strides = [1, 1]} : vector<272x256xf32> to vector<136x256xf32>
    %5 = vector.extract_strided_slice %3 {offsets = [136, 0], sizes = [136, 256], strides = [1, 1]} : vector<272x256xf32> to vector<136x256xf32>
    %6 = arith.mulf %4, %4 : vector<136x256xf32>
    %7 = arith.mulf %5, %5 : vector<136x256xf32>
    %8 = arith.addf %6, %7 : vector<136x256xf32>
    %cst_4 = arith.constant 9.99999971E-10 : f32
    %9 = vector.broadcast %cst_4 : f32 to vector<136x256xf32>
    %10 = arith.addf %8, %9 : vector<136x256xf32>
    %11 = math.sqrt %10 : vector<136x256xf32>
    %c0_5 = arith.constant 0 : index
    %c0_6 = arith.constant 0 : index
    %12 = vector.load %arg4[%c0_5, %c0_6] : memref<32x136xbf16, #tpu.memory_space<vmem>>, vector<32x136xbf16>
    %13 = arith.truncf %11 : vector<136x256xf32> to vector<136x256xbf16>
    %cst_7 = arith.constant dense<0.000000e+00> : vector<32x256xf32>
    %14 = tpu.matmul %12, %13, %cst_7 {dimension_numbers = #tpu.dot_dimension_numbers<[1], [0], [0], [1], [0, 0, 1, 1], [], []>} : vector<32x136xbf16>, vector<136x256xbf16>, vector<32x256xf32> -> vector<32x256xf32>
    %cst_8 = arith.constant 9.99999974E-6 : f32
    %15 = vector.broadcast %cst_8 : f32 to vector<32x256xf32>
    %16 = arith.maximumf %14, %15 : vector<32x256xf32>
    %17 = math.log %16 : vector<32x256xf32>
    %c0_9 = arith.constant 0 : index
    %c0_10 = arith.constant 0 : index
    %c0_11 = arith.constant 0 : index
    %18 = vector.load %arg5[%c0_9, %c0_10, %c0_11] : memref<1x32x256xf32, #tpu.memory_space<vmem>>, vector<1x32x256xf32>
    %19 = vector.shape_cast %18 : vector<1x32x256xf32> to vector<32x256xf32>
    %20 = vector.shape_cast %17 : vector<32x256xf32> to vector<1x32x256xf32>
    tpu.vector_store %arg5[%c0_9, %c0_10, %c0_11], %20 {strides = array<i32>} : memref<1x32x256xf32, #tpu.memory_space<vmem>>, vector<1x32x256xf32>,
    return
  }
  func.func @transform_0(%arg0: i32, %arg1: i32) -> (i32, i32, i32) {
    %c0_i32 = arith.constant 0 : i32
    %c0_i32_0 = arith.constant 0 : i32
    return %arg0, %c0_i32, %arg1 : i32, i32, i32
  }
  func.func @transform_1(%arg0: i32, %arg1: i32) -> (i32, i32) {
    %c0_i32 = arith.constant 0 : i32
    %c0_i32_0 = arith.constant 0 : i32
    %c0_i32_1 = arith.constant 0 : i32
    return %c0_i32, %c0_i32_0 : i32, i32
  }
  func.func @transform_2(%arg0: i32, %arg1: i32) -> (i32, i32) {
    %c0_i32 = arith.constant 0 : i32
    %c0_i32_0 = arith.constant 0 : i32
    %c0_i32_1 = arith.constant 0 : i32
    return %c0_i32, %c0_i32_0 : i32, i32
  }
  func.func @transform_3(%arg0: i32, %arg1: i32) -> (i32, i32, i32) {
    %c0_i32 = arith.constant 0 : i32
    %c0_i32_0 = arith.constant 0 : i32
    return %arg0, %c0_i32, %arg1 : i32, i32, i32
  }
}

module attributes {stable_mosaic.version = 11 : i64} {
  func.func @_mel_kernel(%arg0: i32, %arg1: i32, %arg2: memref<1x256x256xbf16, #tpu.memory_space<vmem>>, %arg3: memref<272x256xbf16, #tpu.memory_space<vmem>>, %arg4: memref<32x136xbf16, #tpu.memory_space<vmem>>, %arg5: memref<1x32x256xf32, #tpu.memory_space<vmem>>) attributes {dimension_semantics = [#tpu.dimension_semantics<parallel>, #tpu.dimension_semantics<parallel>], iteration_bounds = array<i64: 2, 1>, scalar_prefetch = 0 : i64, scratch_operands = 0 : i64, tpu.core_type = #tpu.core_type<tc>, window_params = [{transform_indices = @transform_0, window_bounds = array<i64: 1, 256, 256>}, {pipeline_mode = #tpu.pipeline_mode<synchronous>, transform_indices = @transform_1, window_bounds = array<i64: 272, 256>}, {pipeline_mode = #tpu.pipeline_mode<synchronous>, transform_indices = @transform_2, window_bounds = array<i64: 32, 136>}, {transform_indices = @transform_3, window_bounds = array<i64: 1, 32, 256>}]} {
    %c0 = arith.constant 0 : index
    %c0_0 = arith.constant 0 : index
    %c0_1 = arith.constant 0 : index
    %0 = vector.load %arg2[%c0, %c0_0, %c0_1] : memref<1x256x256xbf16, #tpu.memory_space<vmem>>, vector<1x256x256xbf16>
    %1 = vector.shape_cast %0 : vector<1x256x256xbf16> to vector<256x256xbf16>
    %c0_2 = arith.constant 0 : index
    %c0_3 = arith.constant 0 : index
    %2 = vector.load %arg3[%c0_2, %c0_3] : memref<272x256xbf16, #tpu.memory_space<vmem>>, vector<272x256xbf16>
    %cst = arith.constant dense<0.000000e+00> : vector<272x256xf32>
    %3 = tpu.matmul %2, %1, %cst {dimension_numbers = #tpu.dot_dimension_numbers<[1], [0], [0], [1], [0, 0, 1, 1], [], []>} : vector<272x256xbf16>, vector<256x256xbf16>, vector<272x256xf32> -> vector<272x256xf32>
    %4 = vector.extract_strided_slice %3 {offsets = [0, 0], sizes = [136, 256], strides = [1, 1]} : vector<272x256xf32> to vector<136x256xf32>
    %5 = vector.extract_strided_slice %3 {offsets = [136, 0], sizes = [136, 256], strides = [1, 1]} : vector<272x256xf32> to vector<136x256xf32>
    %6 = arith.mulf %4, %4 : vector<136x256xf32>
    %7 = arith.mulf %5, %5 : vector<136x256xf32>
    %8 = arith.addf %6, %7 : vector<136x256xf32>
    %cst_4 = arith.constant 9.99999971E-10 : f32
    %9 = vector.broadcast %cst_4 : f32 to vector<136x256xf32>
    %10 = arith.addf %8, %9 : vector<136x256xf32>
    %11 = math.sqrt %10 : vector<136x256xf32>
    %c0_5 = arith.constant 0 : index
    %c0_6 = arith.constant 0 : index
    %12 = vector.load %arg4[%c0_5, %c0_6] : memref<32x136xbf16, #tpu.memory_space<vmem>>, vector<32x136xbf16>
    %13 = arith.truncf %11 : vector<136x256xf32> to vector<136x256xbf16>
    %cst_7 = arith.constant dense<0.000000e+00> : vector<32x256xf32>
    %14 = tpu.matmul %12, %13, %cst_7 {dimension_numbers = #tpu.dot_dimension_numbers<[1], [0], [0], [1], [0, 0, 1, 1], [], []>} : vector<32x136xbf16>, vector<136x256xbf16>, vector<32x256xf32> -> vector<32x256xf32>
    %cst_8 = arith.constant 9.99999974E-6 : f32
    %15 = vector.broadcast %cst_8 : f32 to vector<32x256xf32>
    %16 = arith.maximumf %14, %15 : vector<32x256xf32>
    %17 = math.log %16 : vector<32x256xf32>
    %c0_9 = arith.constant 0 : index
    %c0_10 = arith.constant 0 : index
    %c0_11 = arith.constant 0 : index
    %18 = vector.load %arg5[%c0_9, %c0_10, %c0_11] : memref<1x32x256xf32, #tpu.memory_space<vmem>>, vector<1x32x256xf32>
    %19 = vector.shape_cast %18 : vector<1x32x256xf32> to vector<32x256xf32>
    %20 = vector.shape_cast %17 : vector<32x256xf32> to vector<1x32x256xf32>
    tpu.vector_store %arg5[%c0_9, %c0_10, %c0_11], %20 {strides = array<i32>} : memref<1x32x256xf32, #tpu.memory_space<vmem>>, vector<1x32x256xf32>,
    return
  }
  func.func @transform_0(%arg0: i32, %arg1: i32) -> (i32, i32, i32) {
    %c0_i32 = arith.constant 0 : i32
    %c0_i32_0 = arith.constant 0 : i32
    return %arg0, %c0_i32, %arg1 : i32, i32, i32
  }
  func.func @transform_1(%arg0: i32, %arg1: i32) -> (i32, i32) {
    %c0_i32 = arith.constant 0 : i32
    %c0_i32_0 = arith.constant 0 : i32
    %c0_i32_1 = arith.constant 0 : i32
    return %c0_i32, %c0_i32_0 : i32, i32
  }
  func.func @transform_2(%arg0: i32, %arg1: i32) -> (i32, i32) {
    %c0_i32 = arith.constant 0 : i32
    %c0_i32_0 = arith.constant 0 : i32
    %c0_i32_1 = arith.constant 0 : i32
    return %c0_i32, %c0_i32_0 : i32, i32
  }
  func.func @transform_3(%arg0: i32, %arg1: i32) -> (i32, i32, i32) {
    %c0_i32 = arith.constant 0 : i32
    %c0_i32_0 = arith.constant 0 : i32
    return %arg0, %c0_i32, %arg1 : i32, i32, i32
  }
}

</mosaic_0001>

<bundles_post_ra>
// kernel: tpu_custom_call.1
= control target key start
LH: loop header
LB: loop body
LE: loop exit
PB: predicated region body
PF: predicated region fallthrough
CT: control target
= control target key end

     0   :  { %8 = vsyncpa [#allocation3], 0  ;;  %s2871_s0 = inlined_call_operand.hbm [shape: bf16[2,256,256], index: 0, kind: input, shape index: {}]   ;;  %s2872_s1 = inlined_call_operand.hbm [shape: bf16[272,256], index: 1, kind: input, shape index: {}]   ;;  %s2873_s2 = inlined_call_operand.hbm [shape: bf16[32,136], index: 2, kind: input, shape index: {}]   ;;  %s2874_s3 = inlined_call_operand.hbm [shape: f32[2,32,256], index: 3, kind: output, shape index: {}]  }
   0x1   :  { %10 = vsyncpa [#allocation3 + $0x1], 0 }
   0x2   :  { %11 = vsyncpa [#allocation6], 0 }
   0x3   :  { %12 = vsyncpa [#allocation4], 0 }
   0x4   :  { %14 = vsyncpa [#allocation4 + $0x1], 0  ;;  %s2077_s12 = smov 0   ;;  %s2079_s13 = smov 0  }
   0x5   :  { %s2081_s14 = smov 0   ;;  %s2083_s15 = smov 0  }
   0x6   :  { %s2085_s16 = smov 0   ;;  %s2087_s17 = smov 0  }
   0x7 LB: > { %s1473_s18 = sadd.s32 4294967295, %s2047_s17   ;;  %s1474_s19 = sadd.s32 4294967294, %s2047_s17   ;;  %s2047_s17 = sphi %s2087_s17, %s20_s17   ;;  %s2043_s16 = sphi %s2085_s16, %s2902_s16   ;;  %s2039_s15 = sphi %s2083_s15, %s2901_s15   ;;  %s2035_s14 = sphi %s2081_s14, %s2900_s14   ;;  %s2031_s13 = sphi %s2079_s13, %s2899_s13   ;;  %s2027_s12 = sphi %s2077_s12, %s2898_s12  }
   0x8   : > { %p54_p0 = scmp.ne.s32.totalorder %s2031_s13, %s2027_s12  ;;  %p2111_p1 = scmp.eq.s32.totalorder %s1473_s18, 0 }
   0x9   : > { %p2115_p2 = scmp.eq.s32.totalorder %s1473_s18, 1  ;;  %p128_p3 = scmp.eq.s32.totalorder %s1474_s19, 1 }
   0xa   : > { %s2879_s20 = scalar_select %p2111_p1, 1, 0 }
   0xb   : > { %p2121_p4 = por %p2111_p1, %p54_p0  ;;  %p1475_p5 = scmp.ge.s32.totalorder %s2047_s17, 1 }
   0xc   : > { %p2126_p6 = por %p128_p3, %p54_p0  ;;  %p135_p7 = scmp.lt.s32.totalorder %s2047_s17, 3 }
   0xd   : > { %s2881_s22 = scalar_select %p2121_p4, 1, 0 }
   0xe   : > { %s2882_s23 = scalar_select %p2126_p6, 1, 0 }
   0xf   : > { %p2131_p8 = pnand %p1475_p5, %p135_p7  ;;  %s2049_s25 = smov [#allocation5]  }
  0x10   : > { %s147_s26 = sshll.u32 %s2049_s25, 4  ;;  %s2050_s28 = smov [#allocation7]   ;;  %s2135_s26 = int_to_ptr.vmem [resolvable:$true] %s147_s26 }
  0x11   : > { %p1611_p9 = pneg %p2131_p8  ;;  %s160_s29 = sshll.u32 %s2050_s28, 4  ;;  %s2146_s29 = int_to_ptr.vmem [resolvable:$true] %s160_s29 }
  0x12   : > { %s1875_s5 = scalar_lea.hbm %s2872_s1, 4352 }
  0x13   : > { %p2142_p11 = pnand %p1611_p9, %p2111_p1  ;;  %p1876_p12 = scmp.ne.s32.totalorder %s2872_s1, %s1875_s5 }
  0x14   : > { %p1882_p5 = scmp.lt.u32.totalorder %s1875_s5, %s2872_s1 }
  0x15   : > { %p1877_p13 = pneg %p2142_p11 }
  0x17   : > { %p1878_p0 = pnand %p1877_p13, %p1876_p12 }
  0x19   : > { %p1879_p3 = pneg %p1878_p0 }
  0x1b   : > { %p1884_p7 = pnand %p1882_p5, %p1879_p3 }
  0x1d   : > { %1887 = shalt.err (!%p1884_p7)
}
  0x1e   : > { %s1888_s10 = scalar_lea.vmem %s2135_s26, 4352  ;;  %p1896_p1 = scmp.lt.s32.totalorder %s2135_s26, %s2135_s26 }
  0x1f   : > { %p1889_p9 = scmp.ne.s32.totalorder %s2135_s26, %s1888_s10  ;;  %p1897_p12 = scmp.lt.s32.totalorder %s1888_s10, %s1888_s10 }
  0x21   : > { %p1891_p10 = pnand %p1889_p9, %p1877_p13  ;;  %p1898_p0 = por %p1897_p12, %p1896_p1 }
  0x23   : > { %p1892_p6 = pneg %p1891_p10 }
  0x25   : > { %p1899_p4 = pnand %p1898_p0, %p1892_p6 }
  0x27   : > { %1902 = shalt.err (!%p1899_p4)
}
  0x28   : > { %s2051_s11 = smov 128   ;;  %s2052_s18 = smov 8  }
  0x29   : > { %1614 = dma.hbm_to_vmem [thread:$0]  (!%p2142_p11), %s2872_s1, 4352, %s2135_s26, [#allocation6], %s2051_s11, %s2051_s11, %s2052_s18  }
  0x2a   : > { %s1903_s4 = scalar_lea.hbm %s2873_s2, 512 }
  0x2b   : > { %p1904_p1 = scmp.ne.s32.totalorder %s2873_s2, %s1903_s4  ;;  %p1910_p10 = scmp.lt.u32.totalorder %s1903_s4, %s2873_s2 }
  0x2d   : > { %p1906_p4 = pnand %p1904_p1, %p1877_p13 }
  0x2f   : > { %p1907_p6 = pneg %p1906_p4 }
  0x31   : > { %p1912_p3 = pnand %p1910_p10, %p1907_p6 }
  0x33   : > { %1915 = shalt.err (!%p1912_p3)
}
  0x34   : > { %s1916_s26 = scalar_lea.vmem %s2146_s29, 512  ;;  %p1924_p12 = scmp.lt.s32.totalorder %s2146_s29, %s2146_s29 }
  0x35   : > { %p1917_p5 = scmp.ne.s32.totalorder %s2146_s29, %s1916_s26  ;;  %p1925_p0 = scmp.lt.s32.totalorder %s1916_s26, %s1916_s26 }
  0x37   : > { %p1919_p7 = pnand %p1917_p5, %p1877_p13  ;;  %p1926_p1 = por %p1925_p0, %p1924_p12 }
  0x39   : > { %p1920_p9 = pneg %p1919_p7 }
  0x3b   : > { %p1927_p4 = pnand %p1926_p1, %p1920_p9 }
  0x3d   : > { %1930 = shalt.err (!%p1927_p4)
}
  0x3e   : > { %1617 = dma.hbm_to_vmem [thread:$0]  (!%p2142_p11), %s2873_s2, 512, %s2146_s29, [#allocation6], %s2051_s11, %s2051_s11, %s2052_s18  }
  0x3f   : > { %s32_s27 = sadd.s32 1, %s2043_s16  ;;  %s41_s19 = sadd.s32 1, %s2035_s14 }
  0x40   : > { %p34_p13 = scmp.ge.s32.totalorder %s32_s27, 2  ;;  %p48_p6 = scmp.ne.s32.totalorder %s2035_s14, %s2031_s13 }
  0x41   : > { %p49_p10 = scmp.eq.s32.totalorder %s2047_s17, 0  ;;  %p1628_p3 = scmp.lt.s32.totalorder %s2047_s17, 2 }
  0x42   : > { %s2904_s27 = smov (%p34_p13, %s32_s27), 0  ;;  %p2216_p7 = por %p2115_p2, %p48_p6 }
  0x43   : > { %p50_p5 = por %p49_p10, %p48_p6  ;;  %s36_s28 = ssub.s32 %s2043_s16, %s2904_s27 }
  0x44   : > { %s2885_s25 = scalar_select %p2216_p7, 1, 0 }
  0x45   : > { %s174_s30 = sand.u32 1, %s2035_s14   ;;  %p39_p9 = scmp.eq.s32.totalorder %s36_s28, 0 }
  0x46   : > { %s1479_s29 = sshll.u32 %s174_s30, 8  ;;  %s1565_s4 = sshll.u32 %s2043_s16, 12 }
  0x47   : > { %s2225_s5 = scalar_select %p39_p9, %s2035_s14, %s41_s19  }
  0x48   : > { %s2230_s8 = scalar_lea.hbm %s2871_s0, %s1565_s4  ;;  %s178_s21 = scalar_lea.vmem [#allocation2], %s1479_s29 }
  0x49   : > { %s187_s26 = sshll.u32 %s178_s21, 4  ;;  %p2234_p2 = pnand %p1628_p3, %p50_p5  ;;  %s2238_s26 = int_to_ptr.vmem [resolvable:$true] %s187_s26 }
  0x4a   : > { %s2240_s10 = scalar_lea.sflag [#allocation3], %s174_s30  ;;  %s1931_s19 = scalar_lea.hbm %s2230_s8, 4096 }
  0x4b   : > { %p1932_p11 = scmp.ne.s32.totalorder %s2230_s8, %s1931_s19  ;;  %p1933_p12 = pneg %p2234_p2 }
  0x4c   : > { %s1936_s4 = scalar_lea.hbm %s2871_s0, 8192  ;;  %p1937_p4 = scmp.lt.u32.totalorder %s2230_s8, %s2871_s0 }
  0x4d   : > { %p1934_p0 = pnand %p1933_p12, %p1932_p11  ;;  %p1938_p13 = scmp.lt.u32.totalorder %s1936_s4, %s1931_s19 }
  0x4e   : > { %p1940_p10 = scmp.lt.u32.totalorder %s1931_s19, %s2230_s8 }
  0x4f   : > { %p1935_p1 = pneg %p1934_p0  ;;  %p1939_p6 = por %p1938_p13, %p1937_p4 }
  0x51   : > { %p1941_p3 = por %p1940_p10, %p1939_p6 }
  0x53   : > { %p1942_p5 = pnand %p1941_p3, %p1935_p1 }
  0x55   : > { %1945 = shalt.err (!%p1942_p5)
}
  0x56   : > { %s1946_s30 = scalar_lea.vmem %s2238_s26, 4096  ;;  %s2053_s21 = smov [#allocation2]  }
  0x57   : > { %p1947_p9 = scmp.ne.s32.totalorder %s2238_s26, %s1946_s30  ;;  %s1951_s28 = sshll.u32 %s2053_s21, 4  ;;  %s1952_s28 = int_to_ptr.vmem [resolvable:$false] %s1951_s28 }
  0x58   : > { %s1953_s29 = scalar_lea.vmem %s1952_s28, 8192  ;;  %p1954_p7 = scmp.lt.s32.totalorder %s2238_s26, %s1952_s28 }
  0x59   : > { %p1949_p11 = pnand %p1947_p9, %p1933_p12  ;;  %p1955_p4 = scmp.lt.s32.totalorder %s1953_s29, %s1946_s30 }
  0x5b   : > { %p1950_p0 = pneg %p1949_p11  ;;  %p1956_p13 = por %p1955_p4, %p1954_p7 }
  0x5d   : > { %p1957_p6 = pnand %p1956_p13, %p1950_p0 }
  0x5f   : > { %1960 = shalt.err (!%p1957_p6)
}
  0x60   : > { %1621 = dma.hbm_to_vmem [thread:$0]  (!%p2234_p2), %s2230_s8, 4096, %s2238_s26, %s2240_s10, %s2051_s11, %s2051_s11, %s2052_s18  }
  0x61   : > { %199 = sbr.rel (%p2131_p8) target bundleno = 770 (0x302), region = 32  ;;  %s2274_s19 = sand.u32 (!%p2131_p8), 1, %s2031_s13  }
  0x62   : > { %s1483_s4 = sshll.u32 (!%p2131_p8), %s2274_s19, 8  ;;  %s202_s6 = scalar_lea.sflag (!%p2131_p8), [#allocation3], %s2274_s19 }
  0x63   : > { %s2278_s7 = scalar_lea.vmem (!%p2131_p8), [#allocation2], %s1483_s4  ;;  %p2887_p7 = scmp.ne.s32.totalorder (!%p2131_p8), %s2881_s22, 0 }
  0x68   : > { %2014 = dma.done.wait (%p2887_p7), %s202_s6, 4096  }
  0x69   : > { %2016 = vsyncadd (%p2887_p7), %s202_s6, 4294963200  ;;  %p2888_p2 = scmp.ne.s32.totalorder %s2879_s20, 0 }
  0x6b   : > { %2018 = dma.done.wait (%p2888_p2), [#allocation6], 4864  }
  0x6c   : > { %2020 = vsyncadd (%p2888_p2), [#allocation6], 4294962432  ;;  %v1686_v0 = vld [vmem:[%s2278_s7 + $0x4] ss:$8 sps:$4 sm:$0xff]   ;;  %v1688_v1 = vld [vmem:[%s2278_s7] ss:$8 sps:$4 sm:$0xff]  }
  0x6d   : > { %635 = vmatprep.subr.bf16.mxu0 %v1686_v0  ;;  %v1689_v2 = vld [vmem:[%s2278_s7 + $0x14] ss:$8 sps:$4 sm:$0xff]   ;;  %1567 = vmatprep.subr.bf16.mxu1 %v1686_v0  ;;  %v1691_v3 = vld [vmem:[%s2278_s7 + $0x10] ss:$8 sps:$4 sm:$0xff]   ;;  %v1692_v4 = vld [vmem:[%s2278_s7 + $0x24] ss:$8 sps:$4 sm:$0xff]  }
  0x6e   : > { %636 = vmatpush1.bf16.msra.mxu0 %v1688_v1  ;;  %1583 = vmatpush1.bf16.msra.mxu1 %v1688_v1  ;;  %v1694_v5 = vld [vmem:[%s2278_s7 + $0x20] ss:$8 sps:$4 sm:$0xff]   ;;  %v1695_v6 = vld [vmem:[%s2278_s7 + $0x34] ss:$8 sps:$4 sm:$0xff]   ;;  %v1697_v7 = vld [vmem:[%s2278_s7 + $0x30] ss:$8 sps:$4 sm:$0xff]  }
  0x6f   : > { %637 = vmatprep.subr.bf16.mxu0 %v1689_v2  ;;  %1568 = vmatprep.subr.bf16.mxu1 %v1689_v2  ;;  %v1698_v8 = vld [vmem:[%s2278_s7 + $0x44] ss:$8 sps:$4 sm:$0xff]   ;;  %v1700_v9 = vld [vmem:[%s2278_s7 + $0x40] ss:$8 sps:$4 sm:$0xff]   ;;  %v1701_v10 = vld [vmem:[%s2278_s7 + $0x54] ss:$8 sps:$4 sm:$0xff]  }
  0x70   : > { %v1703_v11 = vld [vmem:[%s2278_s7 + $0x50] ss:$8 sps:$4 sm:$0xff]   ;;  %v1704_v12 = vld [vmem:[%s2278_s7 + $0x64] ss:$8 sps:$4 sm:$0xff]   ;;  %v1706_v14 = vld [vmem:[%s2278_s7 + $0x60] ss:$8 sps:$4 sm:$0xff]  }
  0x71   : > { %v1736_v13 = vld [vmem:[#allocation5 + $0x4] ss:$8 sps:$4 sm:$0xff]   ;;  %v1707_v15 = vld [vmem:[%s2278_s7 + $0x74] ss:$8 sps:$4 sm:$0xff]   ;;  %v1709_v17 = vld [vmem:[%s2278_s7 + $0x70] ss:$8 sps:$4 sm:$0xff]  }
  0x72   : > { %638 = vmatpush1.bf16.msra.mxu0 %v1691_v3  ;;  %1584 = vmatpush1.bf16.msra.mxu1 %v1691_v3  ;;  %v1742_v16 = vld [vmem:[#allocation5 + $0xa4] ss:$8 sps:$4 sm:$0xff]   ;;  %v1712_v19 = vld [vmem:[%s2278_s7 + $0x80] ss:$8 sps:$4 sm:$0xff]   ;;  %v1713_v20 = vld [vmem:[%s2278_s7 + $0x94] ss:$8 sps:$4 sm:$0xff]  }
  0x73   : > { %639 = vmatprep.subr.bf16.mxu0 %v1692_v4  ;;  %1569 = vmatprep.subr.bf16.mxu1 %v1692_v4  ;;  %v1710_v18 = vld [vmem:[%s2278_s7 + $0x84] ss:$8 sps:$4 sm:$0xff]   ;;  %v1715_v21 = vld [vmem:[%s2278_s7 + $0x90] ss:$8 sps:$4 sm:$0xff]   ;;  %v1718_v23 = vld [vmem:[%s2278_s7 + $0xa0] ss:$8 sps:$4 sm:$0xff]  }
  0x74   : > { %667 = vmatprep.mubr.bf16.mxu0 %v1736_v13  ;;  %767 = vmatprep.mubr.bf16.mxu1 %v1742_v16  ;;  %v1716_v22 = vld [vmem:[%s2278_s7 + $0xa4] ss:$8 sps:$4 sm:$0xff]   ;;  %v1719_v24 = vld [vmem:[%s2278_s7 + $0xb4] ss:$8 sps:$4 sm:$0xff]   ;;  %v1721_v25 = vld [vmem:[%s2278_s7 + $0xb0] ss:$8 sps:$4 sm:$0xff]  }
  0x75   : > { %v1722_v26 = vld [vmem:[%s2278_s7 + $0xc4] ss:$8 sps:$4 sm:$0xff]   ;;  %v1724_v27 = vld [vmem:[%s2278_s7 + $0xc0] ss:$8 sps:$4 sm:$0xff]   ;;  %v1725_v28 = vld [vmem:[%s2278_s7 + $0xd4] ss:$8 sps:$4 sm:$0xff]  }
  0x76   : > { %640 = vmatpush1.bf16.msra.mxu0 %v1694_v5  ;;  %1585 = vmatpush1.bf16.msra.mxu1 %v1694_v5  ;;  %v1727_v29 = vld [vmem:[%s2278_s7 + $0xd0] ss:$8 sps:$4 sm:$0xff]   ;;  %v1728_v30 = vld [vmem:[%s2278_s7 + $0xe4] ss:$8 sps:$4 sm:$0xff]   ;;  %v1730_v31 = vld [vmem:[%s2278_s7 + $0xe0] ss:$8 sps:$4 sm:$0xff]  }
  0x77   : > { %641 = vmatprep.subr.bf16.mxu0 %v1695_v6  ;;  %1570 = vmatprep.subr.bf16.mxu1 %v1695_v6  ;;  %v1731_v32 = vld [vmem:[%s2278_s7 + $0xf4] ss:$8 sps:$4 sm:$0xff]   ;;  %v1733_v33 = vld [vmem:[%s2278_s7 + $0xf0] ss:$8 sps:$4 sm:$0xff]   ;;  %v1734_v34 = vld [vmem:[#allocation5] ss:$8 sps:$4 sm:$0xff]  }
  0x78   : > { %v1740_v35 = vld [vmem:[#allocation5 + $0xa0] ss:$8 sps:$4 sm:$0xff]   ;;  %v1737_v36 = vld [vmem:[#allocation5 + $0x14] ss:$8 sps:$4 sm:$0xff]   ;;  %v1739_v38 = vld [vmem:[#allocation5 + $0x10] ss:$8 sps:$4 sm:$0xff]  }
  0x79   : > { %v1746_v37 = vld [vmem:[#allocation5 + $0xb4] ss:$8 sps:$4 sm:$0xff]   ;;  %v1748_v39 = vld [vmem:[#allocation5 + $0xb0] ss:$8 sps:$4 sm:$0xff]   ;;  %v1743_v40 = vld [vmem:[#allocation5 + $0x24] ss:$8 sps:$4 sm:$0xff]  }
  0x7a   : > { %642 = vmatpush1.bf16.msra.mxu0 %v1697_v7  ;;  %1586 = vmatpush1.bf16.msra.mxu1 %v1697_v7  ;;  %v1752_v41 = vld [vmem:[#allocation5 + $0xc4] ss:$8 sps:$4 sm:$0xff]   ;;  %v1745_v42 = vld [vmem:[#allocation5 + $0x20] ss:$8 sps:$4 sm:$0xff]   ;;  %v1749_v44 = vld [vmem:[#allocation5 + $0x34] ss:$8 sps:$4 sm:$0xff]  }
  0x7b   : > { %643 = vmatprep.subr.bf16.mxu0 %v1698_v8  ;;  %1571 = vmatprep.subr.bf16.mxu1 %v1698_v8  ;;  %v1754_v43 = vld [vmem:[#allocation5 + $0xc0] ss:$8 sps:$4 sm:$0xff]   ;;  %v1758_v45 = vld [vmem:[#allocation5 + $0xd4] ss:$8 sps:$4 sm:$0xff]   ;;  %v1751_v46 = vld [vmem:[#allocation5 + $0x30] ss:$8 sps:$4 sm:$0xff]  }
  0x7c   : > { %v1760_v47 = vld [vmem:[#allocation5 + $0xd0] ss:$8 sps:$4 sm:$0xff]   ;;  %v1755_v48 = vld [vmem:[#allocation5 + $0x44] ss:$8 sps:$4 sm:$0xff]   ;;  %v1757_v50 = vld [vmem:[#allocation5 + $0x40] ss:$8 sps:$4 sm:$0xff]  }
  0x7d   : > { %v1764_v49 = vld [vmem:[#allocation5 + $0xe4] ss:$8 sps:$4 sm:$0xff]   ;;  %v1766_v51 = vld [vmem:[#allocation5 + $0xe0] ss:$8 sps:$4 sm:$0xff]   ;;  %v1761_v52 = vld [vmem:[#allocation5 + $0x54] ss:$8 sps:$4 sm:$0xff]  }
  0x7e   : > { %644 = vmatpush1.bf16.msra.mxu0 %v1700_v9  ;;  %1587 = vmatpush1.bf16.msra.mxu1 %v1700_v9  ;;  %v1770_v53 = vld [vmem:[#allocation5 + $0xf4] ss:$8 sps:$4 sm:$0xff]   ;;  %v1763_v54 = vld [vmem:[#allocation5 + $0x50] ss:$8 sps:$4 sm:$0xff]   ;;  %v1767_v56 = vld [vmem:[#allocation5 + $0x64] ss:$8 sps:$4 sm:$0xff]  }
  0x7f   : > { %645 = vmatprep.subr.bf16.mxu0 %v1701_v10  ;;  %1572 = vmatprep.subr.bf16.mxu1 %v1701_v10  ;;  %v1772_v55 = vld [vmem:[#allocation5 + $0xf0] ss:$8 sps:$4 sm:$0xff]   ;;  %v1776_v57 = vld [vmem:[#allocation5 + $0x104] ss:$8 sps:$4 sm:$0xff]   ;;  %v1769_v58 = vld [vmem:[#allocation5 + $0x60] ss:$8 sps:$4 sm:$0xff]  }
  0x80   : > { %v1778_v59 = vld [vmem:[#allocation5 + $0x100] ss:$8 sps:$4 sm:$0xff]   ;;  %v1773_v60 = vld [vmem:[#allocation5 + $0x74] ss:$8 sps:$4 sm:$0xff]   ;;  %v1775_v61 = vld [vmem:[#allocation5 + $0x70] ss:$8 sps:$4 sm:$0xff]  }
  0x81   : > { %v1779_v62 = vld [vmem:[#allocation5 + $0x84] ss:$8 sps:$4 sm:$0xff]   ;;  %v1781_v63 = vld [vmem:[#allocation5 + $0x80] ss:$8 sps:$4 sm:$0xff]   ;;  %v1782_v0 = vld [vmem:[#allocation5 + $0x94] ss:$8 sps:$4 sm:$0xff]  }
  0x82   : > { %646 = vmatpush1.bf16.msra.mxu0 %v1703_v11  ;;  %1588 = vmatpush1.bf16.msra.mxu1 %v1703_v11  ;;  %v1784_v1 = vld [vmem:[#allocation5 + $0x90] ss:$8 sps:$4 sm:$0xff]   ;;  %v1787_v8 = vld [vmem:[#allocation7 + $0x4] ss:$8 sps:$4 sm:$0xff]   ;;  %vm1252_vm0 = vcmask 64512   ;;  %s1486_s20 = sshll.u32 %s2274_s19, 6 }
  0x83   : > { %647 = vmatprep.subr.bf16.mxu0 %v1704_v12  ;;  %1573 = vmatprep.subr.bf16.mxu1 %v1704_v12  ;;  %s235_s22 = scalar_lea.vmem [#allocation8], %s1486_s20  ;;  %s1566_s24 = sshll.u32 %s2039_s15, 10 }
  0x84   : > { %s1367_s11 = sshll.u32 %s235_s22, 4  ;;  %s2820_s26 = scalar_lea.hbm %s2874_s3, %s1566_s24  ;;  %s2822_s11 = int_to_ptr.vmem [resolvable:$true] %s1367_s11 }
  0x85   : > { %s1352_s15 = scalar_lea.sflag [#allocation4], %s2274_s19  ;;  %s1961_s9 = scalar_lea.vmem %s2822_s11, 1024 }
  0x86   : > { %648 = vmatpush1.bf16.msra.mxu0 %v1706_v14  ;;  %1589 = vmatpush1.bf16.msra.mxu1 %v1706_v14  ;;  %p1962_p8 = scmp.ne.s32.totalorder %s2822_s11, %s1961_s9  ;;  %p2895_p12 = scmp.ne.s32.totalorder %s2885_s25, 0 }
  0x87   : > { %649 = vmatprep.subr.bf16.mxu0 %v1707_v15  ;;  %1574 = vmatprep.subr.bf16.mxu1 %v1707_v15  ;;  %s2054_s10 = smov [#allocation8]  }
  0x88   : > { %p1963_p1 = pnand %p1962_p8, %p2895_p12  ;;  %s1965_s30 = sshll.u32 %s2054_s10, 4  ;;  %s1966_s30 = int_to_ptr.vmem [resolvable:$false] %s1965_s30 }
  0x89   : > { %s1967_s21 = scalar_lea.vmem %s1966_s30, 2048  ;;  %p1968_p3 = scmp.lt.s32.totalorder %s2822_s11, %s1966_s30 }
  0x8a   : > { %650 = vmatpush1.bf16.msra.mxu0 %v1709_v17  ;;  %1590 = vmatpush1.bf16.msra.mxu1 %v1709_v17  ;;  %p1964_p10 = pneg %p1963_p1  ;;  %p1969_p5 = scmp.lt.s32.totalorder %s1967_s21, %s1961_s9 }
  0x8b   : > { %651 = vmatprep.subr.bf16.mxu0 %v1710_v18  ;;  %1575 = vmatprep.subr.bf16.mxu1 %v1710_v18 }
  0x8c   : > { %p1970_p9 = por %p1969_p5, %p1968_p3 }
  0x8e   : > { %652 = vmatpush1.bf16.msra.mxu0 %v1712_v19  ;;  %1591 = vmatpush1.bf16.msra.mxu1 %v1712_v19  ;;  %p1971_p11 = pnand %p1970_p9, %p1964_p10 }
  0x8f   : > { %653 = vmatprep.subr.bf16.mxu0 %v1713_v20  ;;  %1576 = vmatprep.subr.bf16.mxu1 %v1713_v20 }
  0x92   : > { %654 = vmatpush1.bf16.msra.mxu0 %v1715_v21  ;;  %1592 = vmatpush1.bf16.msra.mxu1 %v1715_v21 }
  0x93   : > { %655 = vmatprep.subr.bf16.mxu0 %v1716_v22  ;;  %1577 = vmatprep.subr.bf16.mxu1 %v1716_v22 }
  0x96   : > { %656 = vmatpush1.bf16.msra.mxu0 %v1718_v23  ;;  %1593 = vmatpush1.bf16.msra.mxu1 %v1718_v23 }
  0x97   : > { %657 = vmatprep.subr.bf16.mxu0 %v1719_v24  ;;  %1578 = vmatprep.subr.bf16.mxu1 %v1719_v24 }
  0x9a   : > { %658 = vmatpush1.bf16.msra.mxu0 %v1721_v25  ;;  %1594 = vmatpush1.bf16.msra.mxu1 %v1721_v25 }
  0x9b   : > { %659 = vmatprep.subr.bf16.mxu0 %v1722_v26  ;;  %1579 = vmatprep.subr.bf16.mxu1 %v1722_v26 }
  0x9e   : > { %660 = vmatpush1.bf16.msra.mxu0 %v1724_v27  ;;  %1595 = vmatpush1.bf16.msra.mxu1 %v1724_v27 }
  0x9f   : > { %661 = vmatprep.subr.bf16.mxu0 %v1725_v28  ;;  %1580 = vmatprep.subr.bf16.mxu1 %v1725_v28 }
  0xa2   : > { %662 = vmatpush1.bf16.msra.mxu0 %v1727_v29  ;;  %1596 = vmatpush1.bf16.msra.mxu1 %v1727_v29 }
  0xa3   : > { %663 = vmatprep.subr.bf16.mxu0 %v1728_v30  ;;  %1581 = vmatprep.subr.bf16.mxu1 %v1728_v30 }
  0xa6   : > { %664 = vmatpush1.bf16.msra.mxu0 %v1730_v31  ;;  %1597 = vmatpush1.bf16.msra.mxu1 %v1730_v31 }
  0xa7   : > { %665 = vmatprep.subr.bf16.mxu0 %v1731_v32  ;;  %1582 = vmatprep.subr.bf16.mxu1 %v1731_v32 }
  0xaa   : > { %666 = vmatpush1.bf16.msra.mxu0 %v1733_v33  ;;  %1598 = vmatpush1.bf16.msra.mxu1 %v1733_v33 }
  0xad   : > { %668 = vmatmul.mubr.bf16.vlgmr.msra.gmra.mrb[0].mxu0 %v1734_v34  ;;  %768 = vmatmul.mubr.bf16.vlgmr.msra.gmra.mrb[0].mxu1 %v1740_v35 }
  0xae   : > { %677 = vmatprep.mubr.bf16.mxu0 %v1737_v36  ;;  %777 = vmatprep.mubr.bf16.mxu1 %v1746_v37 }
  0xb5   : > { %678 = vmatmul.mubr.bf16.gmra.mrb[4].mxu0 %v1739_v38  ;;  %778 = vmatmul.mubr.bf16.gmra.mrb[4].mxu1 %v1748_v39 }
  0xb6   : > { %687 = vmatprep.mubr.bf16.mxu0 %v1743_v40  ;;  %787 = vmatprep.mubr.bf16.mxu1 %v1752_v41 }
  0xbd   : > { %688 = vmatmul.mubr.bf16.gmra.mrb[8].mxu0 %v1745_v42  ;;  %788 = vmatmul.mubr.bf16.gmra.mrb[8].mxu1 %v1754_v43 }
  0xbe   : > { %697 = vmatprep.mubr.bf16.mxu0 %v1749_v44  ;;  %797 = vmatprep.mubr.bf16.mxu1 %v1758_v45 }
  0xc5   : > { %698 = vmatmul.mubr.bf16.gmra.mrb[12].mxu0 %v1751_v46  ;;  %798 = vmatmul.mubr.bf16.gmra.mrb[12].mxu1 %v1760_v47 }
  0xc6   : > { %707 = vmatprep.mubr.bf16.mxu0 %v1755_v48  ;;  %807 = vmatprep.mubr.bf16.mxu1 %v1764_v49 }
  0xcd   : > { %708 = vmatmul.mubr.bf16.gmra.mrb[16].mxu0 %v1757_v50  ;;  %808 = vmatmul.mubr.bf16.gmra.mrb[16].mxu1 %v1766_v51 }
  0xce   : > { %717 = vmatprep.mubr.bf16.mxu0 %v1761_v52  ;;  %817 = vmatprep.mubr.bf16.mxu1 %v1770_v53 }
  0xd5   : > { %718 = vmatmul.mubr.bf16.gmra.mrb[20].mxu0 %v1763_v54  ;;  %818 = vmatmul.mubr.bf16.gmra.mrb[20].mxu1 %v1772_v55 }
  0xd6   : > { %727 = vmatprep.mubr.bf16.mxu0 %v1767_v56  ;;  %827 = vmatprep.mubr.bf16.mxu1 %v1776_v57 }
  0xdd   : > { %728 = vmatmul.mubr.bf16.gmra.mrb[24].mxu0 %v1769_v58  ;;  %828 = vmatmul.mubr.bf16.gmra.mrb[24].mxu1 %v1778_v59 }
  0xde   : > { %737 = vmatprep.mubr.bf16.mxu0 %v1773_v60  ;;  %1558 = vmatprep.mubr.msk.bf16.mxu1 %vm1252_vm0, %v1787_v8 }
  0xe5   : > { %738 = vmatmul.mubr.bf16.gmra.mrb[28].mxu0 %v1775_v61 }
  0xe6   : > { %747 = vmatprep.mubr.bf16.mxu0 %v1779_v62 }
  0xed   : > { %748 = vmatmul.mubr.bf16.gmra.mrb[32].mxu0 %v1781_v63 }
  0xee   : > { %757 = vmatprep.mubr.bf16.mxu0 %v1782_v0 }
  0xf5   : > { %758 = vmatmul.mubr.bf16.gmra.mrb[36].mxu0 %v1784_v1 }
 0x180   : > { %v669_v2 = vpop.f32.mrb[0].mxu0  ;;  %v769_v3 = vpop.f32.mrb[0].mxu1 }
 0x181   : > { %v671_v4 = vpop.f32.mrb[1].mxu0  ;;  %v771_v5 = vpop.f32.mrb[1].mxu1  ;;  %v878_v14 = vmul.f32 %v769_v3, %v769_v3  ;;  %v2327_v45 = vmul.f32 %v669_v2, %v669_v2 }
 0x182   : > { %v673_v6 = vpop.f32.mrb[2].mxu0  ;;  %v773_v7 = vpop.f32.mrb[2].mxu1  ;;  %v879_v17 = vmul.f32 %v771_v5, %v771_v5  ;;  %v2331_v48 = vmul.f32 %v671_v4, %v671_v4 }
 0x183   : > { %v675_v9 = vpop.f32.mrb[3].mxu0  ;;  %v775_v10 = vpop.f32.mrb[3].mxu1  ;;  %v880_v26 = vmul.f32 %v773_v7, %v773_v7  ;;  %v2333_v49 = vmul.f32 %v673_v6, %v673_v6 }
 0x184   : > { %v881_v29 = vmul.f32 %v775_v10, %v775_v10  ;;  %v2337_v52 = vmul.f32 %v675_v9, %v675_v9 }
 0x188   : > { %v679_v11 = vpop.f32.mrb[4].mxu0  ;;  %v779_v12 = vpop.f32.mrb[4].mxu1 }
 0x189   : > { %v681_v13 = vpop.f32.mrb[5].mxu0  ;;  %v781_v15 = vpop.f32.mrb[5].mxu1  ;;  %v882_v33 = vmul.f32 %v779_v12, %v779_v12  ;;  %v2342_v55 = vmul.f32 %v679_v11, %v679_v11 }
 0x18a   : > { %v683_v16 = vpop.f32.mrb[6].mxu0  ;;  %v783_v18 = vpop.f32.mrb[6].mxu1  ;;  %v883_v37 = vmul.f32 %v781_v15, %v781_v15  ;;  %v2347_v60 = vmul.f32 %v681_v13, %v681_v13 }
 0x18b   : > { %v844_v19 = vmul.f32 %v683_v16, %v683_v16  ;;  %v685_v20 = vpop.f32.mrb[7].mxu0  ;;  %v785_v21 = vpop.f32.mrb[7].mxu1  ;;  %v884_v54 = vmul.f32 %v783_v18, %v783_v18 }
 0x18c   : > { %v845_v22 = vmul.f32 %v685_v20, %v685_v20  ;;  %v885_v58 = vmul.f32 %v785_v21, %v785_v21 }
 0x18d   : > { %v912_v23 = vadd.f32 %v878_v14, %v844_v19 }
 0x18e   : > { %v913_v24 = vadd.f32 %v879_v17, %v845_v22 }
 0x18f   : > { %v2321_v25 = vadd.f32 1e-09, %v912_v23 }
 0x190   : > { %v2323_v27 = vadd.f32 1e-09, %v913_v24  ;;  %v689_v28 = vpop.f32.mrb[8].mxu0  ;;  %v789_v30 = vpop.f32.mrb[8].mxu1 }
 0x191   : > { %1791 = vrsqrt.f32 %v2321_v25  ;;  %v846_v31 = vmul.f32 %v689_v28, %v689_v28  ;;  %v691_v32 = vpop.f32.mrb[9].mxu0  ;;  %v791_v34 = vpop.f32.mrb[9].mxu1  ;;  %v886_v63 = vmul.f32 %v789_v30, %v789_v30  ;;  %vm1018_vm1 = vcmp.eq.f32.partialorder %v2321_v25, inf }
 0x192   : > { %v847_v35 = vmul.f32 %v691_v32, %v691_v32  ;;  %v693_v36 = vpop.f32.mrb[10].mxu0  ;;  %v793_v38 = vpop.f32.mrb[10].mxu1  ;;  %1793 = vrsqrt.f32 %v2323_v27  ;;  %v887_v3 = vmul.f32 %v791_v34, %v791_v34  ;;  %vm1025_vm2 = vcmp.eq.f32.partialorder %v2323_v27, inf }
 0x193   : > { %v914_v39 = vadd.f32 %v880_v26, %v846_v31  ;;  %v848_v40 = vmul.f32 %v693_v36, %v693_v36  ;;  %v695_v41 = vpop.f32.mrb[11].mxu0  ;;  %v795_v42 = vpop.f32.mrb[11].mxu1  ;;  %v888_v9 = vmul.f32 %v793_v38, %v793_v38  ;;  %v1028_v14 = vand.u32 2147483648, %v2323_v27 }
 0x194   : > { %v915_v43 = vadd.f32 %v881_v29, %v847_v35  ;;  %v849_v44 = vmul.f32 %v695_v41, %v695_v41  ;;  %v889_v10 = vmul.f32 %v795_v42, %v795_v42  ;;  %v1021_v15 = vand.u32 2147483648, %v2321_v25 }
 0x195   : > { %v2329_v46 = vadd.f32 1e-09, %v914_v39  ;;  %v916_v47 = vadd.f32 %v882_v33, %v848_v40 }
 0x196   : > { %v2335_v50 = vadd.f32 1e-09, %v915_v43  ;;  %v917_v51 = vadd.f32 %v883_v37, %v849_v44 }
 0x197   : > { %1795 = vrsqrt.f32 %v2329_v46  ;;  %v2340_v53 = vadd.f32 1e-09, %v916_v47  ;;  %vm1032_vm4 = vcmp.eq.f32.partialorder %v2329_v46, inf  ;;  %vm1034_vm8 = vcmp.eq.f32.partialorder %v2329_v46, 0.0 }
 0x198   : > { %1797 = vrsqrt.f32 %v2335_v50  ;;  %v2345_v56 = vadd.f32 1e-09, %v917_v51  ;;  %v699_v57 = vpop.f32.mrb[12].mxu0  ;;  %v799_v59 = vpop.f32.mrb[12].mxu1  ;;  %vm1039_vm3 = vcmp.eq.f32.partialorder %v2335_v50, inf  ;;  %v1042_v23 = vand.u32 2147483648, %v2335_v50 }
 0x199   : > { %1799 = vrsqrt.f32 %v2340_v53  ;;  %v850_v61 = vmul.f32 %v699_v57, %v699_v57  ;;  %v701_v62 = vpop.f32.mrb[13].mxu0  ;;  %v801_v0 = vpop.f32.mrb[13].mxu1  ;;  %v890_v19 = vmul.f32 %v799_v59, %v799_v59  ;;  %vm1041_vm5 = vcmp.eq.f32.partialorder %v2335_v50, 0.0 }
 0x19a   : > { %1801 = vrsqrt.f32 %v2345_v56  ;;  %v851_v1 = vmul.f32 %v701_v62, %v701_v62  ;;  %v703_v2 = vpop.f32.mrb[14].mxu0  ;;  %v803_v4 = vpop.f32.mrb[14].mxu1  ;;  %v891_v24 = vmul.f32 %v801_v0, %v801_v0  ;;  %vm1053_vm6 = vcmp.eq.f32.partialorder %v2345_v56, inf }
 0x19b   : > { %v1792_v5 = vpop.eup %1791  ;;  %v918_v6 = vadd.f32 %v884_v54, %v850_v61  ;;  %v852_v7 = vmul.f32 %v703_v2, %v703_v2  ;;  %v705_v8 = vpop.f32.mrb[15].mxu0  ;;  %v2363_v26 = vmul.f32 %v803_v4, %v803_v4  ;;  %vm1055_vm7 = vcmp.eq.f32.partialorder %v2345_v56, 0.0 }
 0x19c   : > { %v805_v11 = vpop.f32.mrb[15].mxu1  ;;  %v919_v12 = vadd.f32 %v885_v58, %v851_v1  ;;  %v853_v13 = vmul.f32 %v705_v8, %v705_v8  ;;  %v1794_v16 = vpop.eup %1793  ;;  %v1017_v22 = vmul.f32 %v1792_v5, %v2321_v25  ;;  %v1056_v38 = vand.u32 2147483648, %v2345_v56 }
 0x19d   : > { %v2355_v17 = vadd.f32 1e-09, %v918_v6  ;;  %v920_v18 = vadd.f32 %v886_v63, %v852_v7  ;;  %v2371_v30 = vmul.f32 %v805_v11, %v805_v11  ;;  %v1024_v32 = vmul.f32 %v1794_v16, %v2323_v27 }
 0x19e   : > { %v2358_v20 = vadd.f32 1e-09, %v919_v12  ;;  %v921_v21 = vadd.f32 %v887_v3, %v853_v13  ;;  %v2383_v43 = vsel %vm1018_vm1, %v2321_v25, %v1017_v22  ;;  %v1035_v44 = vand.u32 2147483648, %v2329_v46 }
 0x19f   : > { %1803 = vrsqrt.f32 %v2355_v17  ;;  %v2375_v34 = vadd.f32 1e-09, %v920_v18  ;;  %v2391_v1 = vsel %vm1025_vm2, %v2323_v27, %v1024_v32  ;;  %vm1046_vm9 = vcmp.eq.f32.partialorder %v2340_v53, inf }
 0x1a0   : > { %v2369_v28 = vadd.f32 1e-09, %v921_v21  ;;  %v709_v29 = vpop.f32.mrb[16].mxu0  ;;  %v809_v31 = vpop.f32.mrb[16].mxu1  ;;  %1805 = vrsqrt.f32 %v2358_v20  ;;  %vm1048_vm10 = vcmp.eq.f32.partialorder %v2340_v53, 0.0  ;;  %vm1067_vm11 = vcmp.eq.f32.partialorder %v2358_v20, inf }
 0x1a1   : > { %v1796_v33 = vpop.eup %1795  ;;  %v854_v35 = vmul.f32 %v709_v29, %v709_v29  ;;  %v711_v36 = vpop.f32.mrb[17].mxu0  ;;  %v894_v7 = vmul.f32 %v809_v31, %v809_v31  ;;  %vm1069_vm12 = vcmp.eq.f32.partialorder %v2358_v20, 0.0  ;;  %vm1060_vm15 = vcmp.eq.f32.partialorder %v2355_v17, inf }
 0x1a2   : > { %v811_v37 = vpop.f32.mrb[17].mxu1  ;;  %v1798_v39 = vpop.eup %1797  ;;  %1807 = vrsqrt.f32 %v2369_v28  ;;  %v855_v40 = vmul.f32 %v711_v36, %v711_v36  ;;  %v1031_v61 = vmul.f32 %v1796_v33, %v2329_v46  ;;  %v1049_v33 = vand.u32 2147483648, %v2340_v53 }
 0x1a3   : > { %v713_v41 = vpop.f32.mrb[18].mxu0  ;;  %v813_v42 = vpop.f32.mrb[18].mxu1  ;;  %v922_v51 = vadd.f32 %v888_v9, %v854_v35  ;;  %v1038_v59 = vmul.f32 %v1798_v39, %v2335_v50  ;;  %1809 = vrsqrt.f32 %v2375_v34  ;;  %v895_v8 = vmul.f32 %v811_v37, %v811_v37 }
 0x1a4   : > { %v1800_v47 = vpop.eup %1799  ;;  %v856_v54 = vmul.f32 %v713_v41, %v713_v41  ;;  %v715_v57 = vpop.f32.mrb[19].mxu0  ;;  %v923_v63 = vadd.f32 %v889_v10, %v855_v40  ;;  %v1033_v10 = vsel %vm1032_vm4, %v2329_v46, %v1031_v61  ;;  %v896_v16 = vmul.f32 %v813_v42, %v813_v42 }
 0x1a5   : > { %v815_v58 = vpop.f32.mrb[19].mxu1  ;;  %v1802_v62 = vpop.eup %1801  ;;  %v857_v0 = vmul.f32 %v715_v57, %v715_v57  ;;  %v1040_v3 = vsel %vm1039_vm3, %v2335_v50, %v1038_v59  ;;  %v2399_v5 = vadd.f32 1e-09, %v922_v51  ;;  %v1045_v11 = vmul.f32 %v1800_v47, %v2340_v53 }
 0x1a6   : > { %v924_v2 = vadd.f32 %v890_v19, %v856_v54  ;;  %v1052_v4 = vmul.f32 %v1802_v62, %v2345_v56  ;;  %v2409_v12 = vadd.f32 1e-09, %v923_v63  ;;  %v2413_v19 = vsel %vm1041_vm5, %v1042_v23, %v1040_v3 }
 0x1a7   : > { %v925_v6 = vadd.f32 %v891_v24, %v857_v0  ;;  %1811 = vrsqrt.f32 %v2399_v5  ;;  %v1047_v37 = vsel %vm1046_vm9, %v2340_v53, %v1045_v11  ;;  %v897_v61 = vmul.f32 %v815_v58, %v815_v58 }
 0x1a8   : > { %v1054_v9 = vsel %vm1053_vm6, %v2345_v56, %v1052_v4  ;;  %v719_v13 = vpop.f32.mrb[20].mxu0  ;;  %v819_v18 = vpop.f32.mrb[20].mxu1  ;;  %v2419_v22 = vadd.f32 1e-09, %v924_v2  ;;  %v2427_v56 = vsel %vm1034_vm8, %v1035_v44, %v1033_v10  ;;  %v2437_v51 = vsel %vm1048_vm10, %v1049_v33, %v1047_v37 }
 0x1a9   : > { %v2417_v21 = vsel %vm1055_vm7, %v1056_v38, %v1054_v9  ;;  %v858_v24 = vmul.f32 %v719_v13, %v719_v13  ;;  %v721_v29 = vpop.f32.mrb[21].mxu0  ;;  %v821_v31 = vpop.f32.mrb[21].mxu1  ;;  %v2432_v39 = vadd.f32 1e-09, %v925_v6  ;;  %1813 = vrsqrt.f32 %v2409_v12 }
 0x1aa   : > { %v1221_v32 = vpack.c.bf16 %v2417_v21, %v2413_v19  ;;  %v1804_v35 = vpop.eup %1803  ;;  %v859_v50 = vmul.f32 %v721_v29, %v721_v29  ;;  %v723_v23 = vpop.f32.mrb[22].mxu0  ;;  %1815 = vrsqrt.f32 %v2419_v22  ;;  %v898_v63 = vmul.f32 %v819_v18, %v819_v18 }
 0x1ab   : > { %v823_v36 = vpop.f32.mrb[22].mxu1  ;;  %v1806_v38 = vpop.eup %1805  ;;  %v926_v40 = vadd.f32 %v2363_v26, %v858_v24  ;;  %v860_v41 = vmul.f32 %v723_v23, %v723_v23  ;;  %1817 = vrsqrt.f32 %v2432_v39  ;;  %v1070_v58 = vand.u32 2147483648, %v2358_v20 }
 0x1ac   : > { %v725_v42 = vpop.f32.mrb[23].mxu0  ;;  %v825_v47 = vpop.f32.mrb[23].mxu1  ;;  %v927_v46 = vadd.f32 %v2371_v30, %v859_v50  ;;  %v1066_v0 = vmul.f32 %v1806_v38, %v2358_v20  ;;  %v899_v30 = vmul.f32 %v821_v31, %v821_v31  ;;  %v900_v3 = vmul.f32 %v823_v36, %v823_v36 }
 0x1ad   : > { %v1808_v54 = vpop.eup %1807  ;;  %v861_v44 = vmul.f32 %v725_v42, %v725_v42  ;;  %v2444_v59 = vadd.f32 1e-09, %v926_v40  ;;  %v928_v26 = vadd.f32 %v894_v7, %v860_v41  ;;  %v2451_v9 = vmul.f32 %v825_v47, %v825_v47 }
 0x1ae   : > { %v2446_v62 = vadd.f32 1e-09, %v927_v46  ;;  %v1810_v2 = vpop.eup %1809  ;;  %v1080_v4 = vmul.f32 %v1808_v54, %v2369_v28  ;;  %vm1081_vm13 = vcmp.eq.f32.partialorder %v2369_v28, inf  ;;  %v1068_v31 = vsel %vm1067_vm11, %v2358_v20, %v1066_v0 }
 0x1af   : > { %v929_v53 = vadd.f32 %v895_v8, %v861_v44  ;;  %1819 = vrsqrt.f32 %v2444_v59  ;;  %v2457_v7 = vadd.f32 1e-09, %v928_v26  ;;  %v1084_v40 = vand.u32 2147483648, %v2369_v28 }
 0x1b0   : > { %v729_v6 = vpop.f32.mrb[24].mxu0  ;;  %v829_v10 = vpop.f32.mrb[24].mxu1  ;;  %1821 = vrsqrt.f32 %v2446_v62  ;;  %v1082_v33 = vsel %vm1081_vm13, %v2369_v28, %v1080_v4  ;;  %vm1083_vm14 = vcmp.eq.f32.partialorder %v2369_v28, 0.0  ;;  %v1059_v54 = vmul.f32 %v1804_v35, %v2355_v17 }
 0x1b1   : > { %v862_v8 = vmul.f32 %v729_v6, %v729_v6  ;;  %v731_v11 = vpop.f32.mrb[25].mxu0  ;;  %v831_v13 = vpop.f32.mrb[25].mxu1  ;;  %v2463_v50 = vadd.f32 1e-09, %v929_v53  ;;  %v2474_v26 = vsel %vm1069_vm12, %v1070_v58, %v1068_v31  ;;  %1823 = vrsqrt.f32 %v2457_v7 }
 0x1b2   : > { %v863_v18 = vmul.f32 %v731_v11, %v731_v11  ;;  %v733_v24 = vpop.f32.mrb[26].mxu0  ;;  %v833_v29 = vpop.f32.mrb[26].mxu1  ;;  %v902_v4 = vmul.f32 %v829_v10, %v829_v10  ;;  %v1073_v10 = vmul.f32 %v1810_v2, %v2375_v34  ;;  %vm1062_vm1 = vcmp.eq.f32.partialorder %v2355_v17, 0.0 }
 0x1b3   : > { %v930_v23 = vadd.f32 %v896_v16, %v862_v8  ;;  %v864_v36 = vmul.f32 %v733_v24, %v733_v24  ;;  %v735_v37 = vpop.f32.mrb[27].mxu0  ;;  %v835_v38 = vpop.f32.mrb[27].mxu1  ;;  %v2476_v16 = vsel %vm1083_vm14, %v1084_v40, %v1082_v33  ;;  %1825 = vrsqrt.f32 %v2463_v50 }
 0x1b4   : > { %v2466_v41 = vpop.eup %1811  ;;  %v931_v42 = vadd.f32 %v897_v61, %v863_v18  ;;  %v865_v47 = vmul.f32 %v735_v37, %v735_v37  ;;  %v1063_v18 = vand.u32 2147483648, %v2355_v17  ;;  %vm1074_vm2 = vcmp.eq.f32.partialorder %v2375_v34, inf }
 0x1b5   : > { %v2470_v46 = vadd.f32 1e-09, %v930_v23  ;;  %v932_v44 = vadd.f32 %v898_v63, %v864_v36  ;;  %v1814_v53 = vpop.eup %1813  ;;  %v903_v63 = vmul.f32 %v831_v13, %v831_v13  ;;  %v1075_v33 = vsel %vm1074_vm2, %v2375_v34, %v1073_v10 }
 0x1b6   : > { %v933_v0 = vadd.f32 %v899_v30, %v865_v47  ;;  %v2481_v28 = vpop.eup %1815  ;;  %v2484_v35 = vadd.f32 1e-09, %v931_v42  ;;  %v1061_v30 = vsel %vm1060_vm15, %v2355_v17, %v1059_v54  ;;  %v1077_v23 = vand.u32 2147483648, %v2375_v34 }
 0x1b7   : > { %1827 = vrsqrt.f32 %v2470_v46  ;;  %v2488_v20 = vadd.f32 1e-09, %v932_v44  ;;  %v1818_v58 = vpop.eup %1817  ;;  %v2501_v42 = vsel %vm1062_vm1, %v1063_v18, %v1061_v30  ;;  %vm1076_vm3 = vcmp.eq.f32.partialorder %v2375_v34, 0.0 }
 0x1b8   : > { %v739_v6 = vpop.f32.mrb[28].mxu0  ;;  %v2495_v13 = vadd.f32 1e-09, %v933_v0  ;;  %v2507_v44 = vsel %vm1076_vm3, %v1077_v23, %v1075_v33  ;;  %v1094_v0 = vmul.f32 %v1814_v53, %v2409_v12  ;;  %1829 = vrsqrt.f32 %v2484_v35 }
 0x1b9   : > { %v866_v8 = vmul.f32 %v739_v6, %v739_v6  ;;  %v741_v11 = vpop.f32.mrb[29].mxu0  ;;  %v2499_v36 = vpop.eup %1819  ;;  %vm1027_vm4 = vcmp.eq.f32.partialorder %v2323_v27, 0.0  ;;  %1831 = vrsqrt.f32 %v2488_v20  ;;  %v904_v10 = vmul.f32 %v833_v29, %v833_v29 }
 0x1ba   : > { %v867_v24 = vmul.f32 %v741_v11, %v741_v11  ;;  %v743_v31 = vpop.f32.mrb[30].mxu0  ;;  %v2504_v17 = vpop.eup %1821  ;;  %1833 = vrsqrt.f32 %v2495_v13  ;;  %vm1095_vm5 = vcmp.eq.f32.partialorder %v2409_v12, inf  ;;  %vm1109_vm6 = vcmp.eq.f32.partialorder %v2432_v39, inf }
 0x1bb   : > { %v934_v2 = vadd.f32 %v900_v3, %v866_v8  ;;  %v868_v37 = vmul.f32 %v743_v31, %v743_v31  ;;  %v745_v40 = vpop.f32.mrb[31].mxu0  ;;  %v905_v8 = vmul.f32 %v835_v38, %v835_v38  ;;  %v2521_v53 = vpop.eup %1823  ;;  %v1096_v18 = vsel %vm1095_vm5, %v2409_v12, %v1094_v0 }
 0x1bc   : > { %v935_v47 = vadd.f32 %v2451_v9, %v867_v24  ;;  %v869_v54 = vmul.f32 %v745_v40, %v745_v40  ;;  %v1108_v9 = vmul.f32 %v1818_v58, %v2432_v39  ;;  %vm1097_vm7 = vcmp.eq.f32.partialorder %v2409_v12, 0.0 }
 0x1bd   : > { %v2511_v6 = vadd.f32 1e-09, %v934_v2  ;;  %v936_v3 = vadd.f32 %v902_v4, %v868_v37  ;;  %v1098_v24 = vand.u32 2147483648, %v2409_v12  ;;  %v1112_v31 = vand.u32 2147483648, %v2432_v39 }
 0x1be   : > { %v937_v34 = vadd.f32 %v903_v63, %v869_v54  ;;  %v2523_v4 = vadd.f32 1e-09, %v935_v47  ;;  %v1110_v29 = vsel %vm1109_vm6, %v2432_v39, %v1108_v9  ;;  %v2528_v63 = vpop.eup %1825  ;;  %vm1111_vm8 = vcmp.eq.f32.partialorder %v2432_v39, 0.0 }
 0x1bf   : > { %1835 = vrsqrt.f32 %v2511_v6  ;;  %v2535_v23 = vadd.f32 1e-09, %v936_v3  ;;  %v2542_v9 = vsel %vm1097_vm7, %v1098_v24, %v1096_v18  ;;  %vm1020_vm9 = vcmp.eq.f32.partialorder %v2321_v25, 0.0 }
 0x1c0   : > { %v749_v11 = vpop.f32.mrb[32].mxu0  ;;  %v2537_v2 = vadd.f32 1e-09, %v937_v34  ;;  %v1087_v34 = vmul.f32 %v2466_v41, %v2399_v5  ;;  %1837 = vrsqrt.f32 %v2523_v4  ;;  %v1101_v12 = vmul.f32 %v2481_v28, %v2419_v22 }
 0x1c1   : > { %v870_v38 = vmul.f32 %v749_v11, %v749_v11  ;;  %v751_v58 = vpop.f32.mrb[33].mxu0  ;;  %v2533_v33 = vpop.eup %1827  ;;  %v2544_v11 = vsel %vm1111_vm8, %v1112_v31, %v1110_v29  ;;  %1839 = vrsqrt.f32 %v2535_v23  ;;  %vm1088_vm10 = vcmp.eq.f32.partialorder %v2399_v5, inf }
 0x1c2   : > { %v871_v37 = vmul.f32 %v751_v58, %v751_v58  ;;  %v753_v40 = vpop.f32.mrb[34].mxu0  ;;  %v2569_v41 = vpop.eup %1829  ;;  %1841 = vrsqrt.f32 %v2537_v2  ;;  %v1089_v25 = vsel %vm1088_vm10, %v2399_v5, %v1087_v34  ;;  %vm1102_vm11 = vcmp.eq.f32.partialorder %v2419_v22, inf }
 0x1c3   : > { %v938_v47 = vadd.f32 %v904_v10, %v870_v38  ;;  %v872_v54 = vmul.f32 %v753_v40, %v753_v40  ;;  %v755_v0 = vpop.f32.mrb[35].mxu0  ;;  %v1103_v38 = vsel %vm1102_vm11, %v2419_v22, %v1101_v12  ;;  %vm1090_vm12 = vcmp.eq.f32.partialorder %v2399_v5, 0.0 }
 0x1c4   : > { %v939_v30 = vadd.f32 %v905_v8, %v871_v37  ;;  %v873_v61 = vmul.f32 %v755_v0, %v755_v0  ;;  %v2562_v8 = vsel %vm1027_vm4, %v1028_v14, %v2391_v1  ;;  %v1105_v31 = vand.u32 2147483648, %v2419_v22 }
 0x1c5   : > { %v906_v39 = vadd.f32 %v872_v54, %v2327_v45  ;;  %v2567_v45 = vsel %vm1020_vm9, %v1021_v15, %v2383_v43  ;;  %v2578_v27 = vadd.f32 1e-09, %v938_v47  ;;  %vm1104_vm13 = vcmp.eq.f32.partialorder %v2419_v22, 0.0 }
 0x1c6   : > { %v907_v10 = vadd.f32 %v873_v61, %v2331_v48  ;;  %v1091_v48 = vand.u32 2147483648, %v2399_v5  ;;  %v2576_v61 = vpop.eup %1831  ;;  %v2586_v43 = vadd.f32 1e-09, %v939_v30  ;;  %vm1123_vm14 = vcmp.eq.f32.partialorder %v2446_v62, inf }
 0x1c7   : > { %v2572_v28 = vadd.f32 1e-09, %v906_v39  ;;  %v2584_v15 = vpop.eup %1833  ;;  %v2601_v39 = vsel %vm1104_vm13, %v1105_v31, %v1103_v38  ;;  %vm1125_vm4 = vcmp.eq.f32.partialorder %v2446_v62, 0.0  ;;  %vm1137_vm6 = vcmp.eq.f32.partialorder %v2463_v50, inf }
 0x1c8   : > { %v2580_v14 = vadd.f32 1e-09, %v907_v10  ;;  %v759_v1 = vpop.f32.mrb[36].mxu0  ;;  %v2596_v54 = vsel %vm1090_vm12, %v1091_v48, %v1089_v25  ;;  %v1122_v48 = vmul.f32 %v2504_v17, %v2446_v62  ;;  %v1136_v17 = vmul.f32 %v2528_v63, %v2463_v50 }
 0x1c9   : > { %1843 = vrsqrt.f32 %v2572_v28  ;;  %v874_v18 = vmul.f32 %v759_v1, %v759_v1  ;;  %v761_v29 = vpop.f32.mrb[37].mxu0  ;;  %v2593_v37 = vpop.eup %1835  ;;  %vm976_vm15 = vcmp.eq.f32.partialorder %v2572_v28, inf  ;;  %vm978_vm1 = vcmp.eq.f32.partialorder %v2572_v28, 0.0 }
 0x1ca   : > { %1845 = vrsqrt.f32 %v2580_v14  ;;  %v875_v58 = vmul.f32 %v761_v29, %v761_v29  ;;  %v763_v24 = vpop.f32.mrb[38].mxu0  ;;  %vm983_vm2 = vcmp.eq.f32.partialorder %v2580_v14, inf  ;;  %vm985_vm3 = vcmp.eq.f32.partialorder %v2580_v14, 0.0 }
 0x1cb   : > { %v908_v40 = vadd.f32 %v874_v18, %v2333_v49  ;;  %v876_v30 = vmul.f32 %v763_v24, %v763_v24  ;;  %v765_v47 = vpop.f32.mrb[39].mxu0  ;;  %1847 = vrsqrt.f32 %v2578_v27  ;;  %v986_v18 = vand.u32 2147483648, %v2580_v14 }
 0x1cc   : > { %v909_v0 = vadd.f32 %v875_v58, %v2337_v52  ;;  %v877_v34 = vmul.f32 %v765_v47, %v765_v47  ;;  %1849 = vrsqrt.f32 %v2586_v43  ;;  %v2615_v52 = vpop.eup %1837  ;;  %v979_v29 = vand.u32 2147483648, %v2572_v28 }
 0x1cd   : > { %v2604_v5 = vadd.f32 1e-09, %v908_v40  ;;  %v910_v12 = vadd.f32 %v876_v30, %v2342_v55  ;;  %v2622_v55 = vpop.eup %1839  ;;  %v1124_v38 = vsel %vm1123_vm14, %v2446_v62, %v1122_v48  ;;  %v1126_v63 = vand.u32 2147483648, %v2446_v62 }
 0x1ce   : > { %v2609_v10 = vadd.f32 1e-09, %v909_v0  ;;  %v911_v22 = vadd.f32 %v877_v34, %v2347_v60  ;;  %v2630_v25 = vpop.eup %1841  ;;  %v1138_v34 = vsel %vm1137_vm6, %v2463_v50, %v1136_v17  ;;  %vm1139_vm11 = vcmp.eq.f32.partialorder %v2463_v50, 0.0 }
 0x1cf   : > { %1851 = vrsqrt.f32 %v2604_v5  ;;  %v2618_v1 = vadd.f32 1e-09, %v910_v12  ;;  %vm990_vm5 = vcmp.eq.f32.partialorder %v2604_v5, inf  ;;  %v993_v31 = vand.u32 2147483648, %v2604_v5 }
 0x1d0   : > { %1853 = vrsqrt.f32 %v2609_v10  ;;  %v2625_v60 = vadd.f32 1e-09, %v911_v22  ;;  %v1000_v24 = vand.u32 2147483648, %v2609_v10  ;;  %vm997_vm7 = vcmp.eq.f32.partialorder %v2609_v10, inf }
 0x1d1   : > { %1855 = vrsqrt.f32 %v2618_v1  ;;  %vm992_vm8 = vcmp.eq.f32.partialorder %v2604_v5, 0.0  ;;  %v1007_v0 = vand.u32 2147483648, %v2618_v1  ;;  %v1140_v12 = vand.u32 2147483648, %v2463_v50 }
 0x1d2   : > { %1857 = vrsqrt.f32 %v2625_v60  ;;  %v1014_v40 = vand.u32 2147483648, %v2625_v60  ;;  %vm999_vm9 = vcmp.eq.f32.partialorder %v2609_v10, 0.0  ;;  %vm1004_vm10 = vcmp.eq.f32.partialorder %v2618_v1, inf }
 0x1d3   : > { %v1844_v58 = vpop.eup %1843  ;;  %v2658_v48 = vsel %vm1125_vm4, %v1126_v63, %v1124_v38  ;;  %vm1011_vm12 = vcmp.eq.f32.partialorder %v2625_v60, inf  ;;  %vm1006_vm13 = vcmp.eq.f32.partialorder %v2618_v1, 0.0  ;;  %vm1116_vm14 = vcmp.eq.f32.partialorder %v2444_v59, inf }
 0x1d4   : > { %v1846_v30 = vpop.eup %1845  ;;  %v975_v47 = vmul.f32 %v1844_v58, %v2572_v28  ;;  %v1115_v58 = vmul.f32 %v2499_v36, %v2444_v59  ;;  %v1129_v62 = vmul.f32 %v2521_v53, %v2457_v7  ;;  %vm1013_vm4 = vcmp.eq.f32.partialorder %v2625_v60, 0.0 }
 0x1d5   : > { %v982_v22 = vmul.f32 %v1846_v30, %v2580_v14  ;;  %v2663_v49 = vpop.eup %1847  ;;  %v2670_v30 = vsel %vm1139_vm11, %v1140_v12, %v1138_v34  ;;  %vm1130_vm6 = vcmp.eq.f32.partialorder %v2457_v7, inf  ;;  %v1133_v38 = vand.u32 2147483648, %v2457_v7 }
 0x1d6   : > { %v977_v17 = vsel %vm976_vm15, %v2572_v28, %v975_v47  ;;  %v2675_v50 = vpop.eup %1849  ;;  %v1117_v63 = vsel %vm1116_vm14, %v2444_v59, %v1115_v58  ;;  %v1119_v47 = vand.u32 2147483648, %v2444_v59  ;;  %vm1118_vm15 = vcmp.eq.f32.partialorder %v2444_v59, 0.0 }
 0x1d7   : > { %v984_v36 = vsel %vm983_vm2, %v2580_v14, %v982_v22  ;;  %v980_v53 = vsel %vm978_vm1, %v979_v29, %v977_v17  ;;  %v1131_v3 = vsel %vm1130_vm6, %v2457_v7, %v1129_v62  ;;  %v1150_v58 = vmul.f32 %v2569_v41, %v2484_v35 }
 0x1d8   : > { %v987_v34 = vsel %vm985_vm3, %v986_v18, %v984_v36  ;;  %v2691_v22 = vsel %vm1118_vm15, %v1119_v47, %v1117_v63  ;;  %vm1132_vm2 = vcmp.eq.f32.partialorder %v2457_v7, 0.0  ;;  %vm1151_vm1 = vcmp.eq.f32.partialorder %v2484_v35, inf }
 0x1d9   : > { %v1852_v12 = vpop.eup %1851  ;;  %v1164_v59 = vmul.f32 %v2584_v15, %v2495_v13  ;;  %v2703_v29 = vsel %vm1132_vm2, %v1133_v38, %v1131_v3  ;;  %vm1153_vm3 = vcmp.eq.f32.partialorder %v2484_v35, 0.0  ;;  %v1154_v17 = vand.u32 2147483648, %v2484_v35 }
 0x1da   : > { %v1854_v57 = vpop.eup %1853  ;;  %v989_v14 = vmul.f32 %v1852_v12, %v2604_v5  ;;  %v1226_v36 = vpack.c.bf16 %v2703_v29, %v2691_v22  ;;  %v1152_v15 = vsel %vm1151_vm1, %v2484_v35, %v1150_v58  ;;  %vm1165_vm11 = vcmp.eq.f32.partialorder %v2495_v13, inf  ;;  %v1790_v22 = vld [vmem:[#allocation7 + $0x10] ss:$8 sps:$4 sm:$0xff]  }
 0x1db   : > { %v1856_v28 = vpop.eup %1855  ;;  %v996_v18 = vmul.f32 %v1854_v57, %v2609_v10  ;;  %v1166_v58 = vsel %vm1165_vm11, %v2495_v13, %v1164_v59  ;;  %v1161_v35 = vand.u32 2147483648, %v2488_v20  ;;  %vm1193_vm14 = vcmp.eq.f32.partialorder %v2537_v2, inf }
 0x1dc   : > { %v1858_v41 = vpop.eup %1857  ;;  %v991_v62 = vsel %vm990_vm5, %v2604_v5, %v989_v14  ;;  %v1003_v7 = vmul.f32 %v1856_v28, %v2618_v1  ;;  %v1168_v28 = vand.u32 2147483648, %v2495_v13  ;;  %vm1167_vm5 = vcmp.eq.f32.partialorder %v2495_v13, 0.0 }
 0x1dd   : > { %v998_v57 = vsel %vm997_vm7, %v2609_v10, %v996_v18  ;;  %v994_v3 = vsel %vm992_vm8, %v993_v31, %v991_v62  ;;  %v1010_v38 = vmul.f32 %v1858_v41, %v2625_v60  ;;  %vm1144_vm7 = vcmp.eq.f32.partialorder %v2470_v46, inf }
 0x1de   : > { %v1001_v63 = vsel %vm999_vm9, %v1000_v24, %v998_v57  ;;  %v1216_v47 = vpack.c.bf16 %v994_v3, %v980_v53  ;;  %v1005_v12 = vsel %vm1004_vm10, %v2618_v1, %v1003_v7  ;;  %v1155_v1 = vsel %vm1153_vm3, %v1154_v17, %v1152_v15 }
 0x1df   : > { %v1217_v14 = vpack.c.bf16 %v1001_v63, %v987_v34  ;;  %v1012_v5 = vsel %vm1011_vm12, %v2625_v60, %v1010_v38  ;;  %v1008_v31 = vsel %vm1006_vm13, %v1007_v0, %v1005_v12  ;;  %v1143_v34 = vmul.f32 %v2533_v33, %v2470_v46 }
 0x1e0   : > { %v1015_v10 = vsel %vm1013_vm4, %v1014_v40, %v1012_v5  ;;  %v1218_v24 = vpack.c.bf16 %v2567_v45, %v1008_v31  ;;  %v1169_v0 = vsel %vm1167_vm5, %v1168_v28, %v1166_v58  ;;  %v1147_v45 = vand.u32 2147483648, %v2470_v46 }
 0x1e1   : > { %1266 = vmatprep.subr.bf16.mxu1 %v1217_v14  ;;  %v1219_v53 = vpack.c.bf16 %v2562_v8, %v1015_v10  ;;  %v1229_v59 = vpack.c.bf16 %v1169_v0, %v1155_v1  ;;  %v1145_v60 = vsel %vm1144_vm7, %v2470_v46, %v1143_v34  ;;  %v1157_v13 = vmul.f32 %v2576_v61, %v2488_v20 }
 0x1e2   : > { %1267 = vmatpush1.bf16.msra.mxu1 %v1216_v47  ;;  %vm1146_vm8 = vcmp.eq.f32.partialorder %v2470_v46, 0.0  ;;  %vm1158_vm9 = vcmp.eq.f32.partialorder %v2488_v20, inf  ;;  %v1178_v33 = vmul.f32 %v2615_v52, %v2523_v4  ;;  %vm1160_vm10 = vcmp.eq.f32.partialorder %v2488_v20, 0.0 }
 0x1e3   : > { %1268 = vmatprep.subr.bf16.mxu1 %v1219_v53  ;;  %v1148_v8 = vsel %vm1146_vm8, %v1147_v45, %v1145_v60  ;;  %v1159_v40 = vsel %vm1158_vm9, %v2488_v20, %v1157_v13  ;;  %vm1179_vm12 = vcmp.eq.f32.partialorder %v2523_v4, inf  ;;  %v1182_v17 = vand.u32 2147483648, %v2523_v4 }
 0x1e4   : > { %v1162_v18 = vsel %vm1160_vm10, %v1161_v35, %v1159_v40  ;;  %v1180_v61 = vsel %vm1179_vm12, %v2523_v4, %v1178_v33  ;;  %v1192_v46 = vmul.f32 %v2630_v25, %v2537_v2  ;;  %vm1181_vm13 = vcmp.eq.f32.partialorder %v2523_v4, 0.0 }
 0x1e5   : > { %v1228_v41 = vpack.c.bf16 %v1162_v18, %v1148_v8  ;;  %v1196_v52 = vand.u32 2147483648, %v2537_v2  ;;  %v1183_v20 = vsel %vm1181_vm13, %v1182_v17, %v1180_v61  ;;  %vm1195_vm4 = vcmp.eq.f32.partialorder %v2537_v2, 0.0 }
 0x1e6   : > { %1269 = vmatpush1.bf16.msra.mxu1 %v1218_v24  ;;  %v1194_v62 = vsel %vm1193_vm14, %v2537_v2, %v1192_v46  ;;  %v1171_v25 = vmul.f32 %v2593_v37, %v2511_v6  ;;  %vm1172_vm15 = vcmp.eq.f32.partialorder %v2511_v6, inf  ;;  %v1175_v4 = vand.u32 2147483648, %v2511_v6 }
 0x1e7   : > { %1270 = vmatprep.subr.bf16.mxu1 %v1221_v32  ;;  %v1197_v7 = vsel %vm1195_vm4, %v1196_v52, %v1194_v62  ;;  %v1185_v15 = vmul.f32 %v2622_v55, %v2535_v23  ;;  %vm1186_vm6 = vcmp.eq.f32.partialorder %v2535_v23, inf  ;;  %v1189_v21 = vand.u32 2147483648, %v2535_v23 }
 0x1e8   : > { %v1231_v57 = vpack.c.bf16 %v1197_v7, %v1183_v20  ;;  %v1173_v19 = vsel %vm1172_vm15, %v2511_v6, %v1171_v25  ;;  %v2889_v32 = vpack.c.bf16 %v2437_v51, %v2427_v56  ;;  %vm1174_vm2 = vcmp.eq.f32.partialorder %v2511_v6, 0.0 }
 0x1e9   : > { %v1187_v2 = vsel %vm1186_vm6, %v2535_v23, %v1185_v15  ;;  %vm1188_vm1 = vcmp.eq.f32.partialorder %v2535_v23, 0.0  ;;  %v2890_v37 = vpack.c.bf16 %v2476_v16, %v2474_v26  ;;  %v1176_v55 = vsel %vm1174_vm2, %v1175_v4, %v1173_v19 }
 0x1ea   : > { %1271 = vmatpush1.bf16.msra.mxu1 %v2889_v32  ;;  %v1190_v3 = vsel %vm1188_vm1, %v1189_v21, %v1187_v2  ;;  %v2891_v63 = vpack.c.bf16 %v2507_v44, %v2501_v42  ;;  %v2892_v56 = vpack.c.bf16 %v2544_v11, %v2542_v9  ;;  %v2893_v51 = vpack.c.bf16 %v2601_v39, %v2596_v54 }
 0x1eb   : > { %1272 = vmatprep.subr.bf16.mxu1 %v2890_v37  ;;  %v1230_v38 = vpack.c.bf16 %v1190_v3, %v1176_v55  ;;  %v2894_v6 = vpack.c.bf16 %v2670_v30, %v2658_v48  ;;  %v1206_v26 = vmul.f32 %v2675_v50, %v2586_v43  ;;  %v1199_v16 = vmul.f32 %v2663_v49, %v2578_v27  ;;  %v1785_v30 = vld [vmem:[#allocation7] ss:$8 sps:$4 sm:$0xff]   ;;  %v1788_v50 = vld [vmem:[#allocation7 + $0x14] ss:$8 sps:$4 sm:$0xff]  }
 0x1ec   : > { %vm1207_vm3 = vcmp.eq.f32.partialorder %v2586_v43, inf  ;;  %vm1200_vm11 = vcmp.eq.f32.partialorder %v2578_v27, inf  ;;  %v1210_v23 = vand.u32 2147483648, %v2586_v43  ;;  %v1203_v9 = vand.u32 2147483648, %v2578_v27 }
 0x1ed   : > { %v1208_v42 = vsel %vm1207_vm3, %v2586_v43, %v1206_v26  ;;  %v1201_v44 = vsel %vm1200_vm11, %v2578_v27, %v1199_v16  ;;  %vm1209_vm5 = vcmp.eq.f32.partialorder %v2586_v43, 0.0  ;;  %vm1202_vm7 = vcmp.eq.f32.partialorder %v2578_v27, 0.0 }
 0x1ee   : > { %1273 = vmatpush1.bf16.msra.mxu1 %v2891_v63  ;;  %v1211_v11 = vsel %vm1209_vm5, %v1210_v23, %v1208_v42  ;;  %v1204_v54 = vsel %vm1202_vm7, %v1203_v9, %v1201_v44  ;;  %vm1259_vm8 = vcmask 1043456  }
 0x1ef   : > { %1274 = vmatprep.subr.bf16.mxu1 %v2892_v56  ;;  %v1233_v39 = vpack.c.bf16 %v1211_v11, %v1211_v11  ;;  %v1232_v49 = vpack.c.bf16 %v1204_v54, %v1204_v54 }
 0x1f1   : > { %v1261_v48 = vsel %vm1259_vm8, %v1232_v49, 0 }
 0x1f2   : > { %1275 = vmatpush1.bf16.msra.mxu1 %v2893_v51 }
 0x1f3   : > { %1276 = vmatprep.subr.bf16.mxu1 %v2894_v6 }
 0x1f6   : > { %1277 = vmatpush1.bf16.msra.mxu1 %v1226_v36 }
 0x1f7   : > { %1278 = vmatprep.subr.bf16.mxu1 %v1229_v59 }
 0x1fa   : > { %1279 = vmatpush1.bf16.msra.mxu1 %v1228_v41 }
 0x1fb   : > { %1280 = vmatprep.subr.bf16.mxu1 %v1231_v57 }
 0x1fe   : > { %1281 = vmatpush1.bf16.msra.mxu1 %v1230_v38 }
 0x1ff   : > { %1557 = vmatprep.subr.msk.bf16.mxu1 %vm1259_vm8, %v1233_v39 }
 0x202   : > { %1283 = vmatpush1.bf16.msra.mxu1 %v1261_v48 }
 0x205   : > { %1299 = vmatmul.mubr.bf16.vlgmr.msra.gmra.mrb[28].mxu1 %v1785_v30 }
 0x206   : > { %1559 = vmatprep.mubr.msk.bf16.mxu1 %vm1252_vm0, %v1788_v50 }
 0x20d   : > { %1309 = vmatmul.mubr.bf16.gmra.mrb[32].mxu1 %v1790_v22 }
 0x2d8   : > { %v1300_v27 = vpop.f32.mrb[28].mxu1 }
 0x2d9   : > { %v1319_v43 = vmax.f32 %v1300_v27, 1e-05  ;;  %v1302_v29 = vpop.f32.mrb[29].mxu1 }
 0x2da   : > { %v1320_v36 = vmax.f32 %v1302_v29, 1e-05  ;;  %v1304_v47 = vpop.f32.mrb[30].mxu1 }
 0x2db   : > { %1859 = vlog2.f32 %v1319_v43  ;;  %v1321_v12 = vmax.f32 %v1304_v47, 1e-05  ;;  %v1306_v58 = vpop.f32.mrb[31].mxu1 }
 0x2dc   : > { %1861 = vlog2.f32 %v1320_v36  ;;  %v1322_v14 = vmax.f32 %v1306_v58, 1e-05 }
 0x2dd   : > { %1863 = vlog2.f32 %v1321_v12 }
 0x2de   : > { %1865 = vlog2.f32 %v1322_v14 }
 0x2e0   : > { %v1310_v5 = vpop.f32.mrb[32].mxu1 }
 0x2e1   : > { %v1323_v31 = vmax.f32 %v1310_v5, 1e-05  ;;  %v1312_v28 = vpop.f32.mrb[33].mxu1 }
 0x2e2   : > { %v1324_v10 = vmax.f32 %v1312_v28, 1e-05  ;;  %v1314_v24 = vpop.f32.mrb[34].mxu1 }
 0x2e3   : > { %1867 = vlog2.f32 %v1323_v31  ;;  %v1325_v34 = vmax.f32 %v1314_v24, 1e-05  ;;  %v1316_v53 = vpop.f32.mrb[35].mxu1 }
 0x2e4   : > { %1869 = vlog2.f32 %v1324_v10  ;;  %v1326_v1 = vmax.f32 %v1316_v53, 1e-05 }
 0x2e5   : > { %v1860_v0 = vpop.eup %1859  ;;  %1871 = vlog2.f32 %v1325_v34 }
 0x2e6   : > { %v1862_v59 = vpop.eup %1861  ;;  %v1328_v60 = vmul.f32 0.6931472, %v1860_v0  ;;  %1873 = vlog2.f32 %v1326_v1 }
 0x2e7   : > { %v1864_v45 = vpop.eup %1863  ;;  %v1330_v13 = vmul.f32 0.6931472, %v1862_v59 }
 0x2e8   : > { %v1866_v35 = vpop.eup %1865  ;;  %1343 = vst [vmem:[%s235_s22] sm:$0xff] %v1328_v60  ;;  %v1332_v33 = vmul.f32 0.6931472, %v1864_v45 }
 0x2e9   : > { %1344 = vst [vmem:[%s235_s22 + $0x8] sm:$0xff] %v1330_v13  ;;  %v1334_v8 = vmul.f32 0.6931472, %v1866_v35 }
 0x2ea   : > { %1345 = vst [vmem:[%s235_s22 + $0x10] sm:$0xff] %v1332_v33 }
 0x2eb   : > { %1346 = vst [vmem:[%s235_s22 + $0x18] sm:$0xff] %v1334_v8 }
 0x2ed   : > { %v1868_v40 = vpop.eup %1867 }
 0x2ee   : > { %v1870_v18 = vpop.eup %1869  ;;  %v1336_v61 = vmul.f32 0.6931472, %v1868_v40 }
 0x2ef   : > { %v1872_v17 = vpop.eup %1871  ;;  %v1338_v46 = vmul.f32 0.6931472, %v1870_v18 }
 0x2f0   : > { %v1874_v41 = vpop.eup %1873  ;;  %1347 = vst [vmem:[%s235_s22 + $0x20] sm:$0xff] %v1336_v61  ;;  %v1340_v52 = vmul.f32 0.6931472, %v1872_v17 }
 0x2f1   : > { %1348 = vst [vmem:[%s235_s22 + $0x28] sm:$0xff] %v1338_v46  ;;  %v1342_v20 = vmul.f32 0.6931472, %v1874_v41 }
 0x2f2   : > { %1349 = vst [vmem:[%s235_s22 + $0x30] sm:$0xff] %v1340_v52 }
 0x2f3   : > { %1350 = vst [vmem:[%s235_s22 + $0x38] sm:$0xff] %v1342_v20 }
 0x2f4   : > { %1974 = shalt.err (!%p1971_p11)
}
 0x2f5   : > { %s1975_s28 = scalar_lea.hbm %s2820_s26, 1024  ;;  %s1979_s6 = scalar_lea.hbm %s2874_s3, 2048 }
 0x2f6   : > { %p1976_p0 = scmp.ne.s32.totalorder %s2820_s26, %s1975_s28  ;;  %p1980_p6 = scmp.lt.u32.totalorder %s2820_s26, %s2874_s3 }
 0x2f7   : > { %p1981_p7 = scmp.lt.u32.totalorder %s1979_s6, %s1975_s28  ;;  %p1983_p8 = scmp.lt.u32.totalorder %s1975_s28, %s2820_s26 }
 0x2f8   : > { %p1977_p4 = pnand %p1976_p0, %p2895_p12 }
 0x2f9   : > { %p1982_p2 = por %p1981_p7, %p1980_p6 }
 0x2fa   : > { %p1978_p13 = pneg %p1977_p4 }
 0x2fb   : > { %p1984_p1 = por %p1983_p8, %p1982_p2 }
 0x2fd   : > { %p1985_p10 = pnand %p1984_p1, %p1978_p13 }
 0x2ff   : > { %1988 = shalt.err (!%p1985_p10)
}
 0x300   : > { %s2055_s22 = smov 256   ;;  %s2056_s24 = smov 16  }
 0x301   : > { %1609 = dma.vmem_to_hbm [thread:$0]  (%p2895_p12), %s2822_s11, 1024, %s2820_s26, %s1352_s15, %s2055_s22, %s2055_s22, %s2056_s24  }
 0x302 PF: > { %s1382_s18 = sand.u32 1, %s2027_s12   ;;  %p2896_p3 = scmp.ne.s32.totalorder %s2882_s23, 0 }
 0x303   : > { %p2897_p5 = scmp.ge.s32.totalorder %s2047_s17, 2  ;;  %s1383_s8 = scalar_lea.sflag [#allocation4], %s1382_s18 }
 0x305   : > { %p1623_p9 = pnand %p2897_p5, %p2896_p3 }
 0x307   : > { %2022 = dma.done.wait (!%p1623_p9), %s1383_s8, 1024  }
 0x308   : > { %2024 = vsyncadd (!%p1623_p9), %s1383_s8, 4294966272  ;;  %s20_s17 = sadd.s32 1, %s2047_s17   ;;  %s2898_s12 = smov %s2031_s13 }
 0x309   : > { %p17_p11 = scmp.ge.s32.totalorder %s20_s17, 4   ;;  %s2899_s13 = smov %s2035_s14 }
 0x30a   : > { %s2900_s14 = smov %s2225_s5  ;;  %s2901_s15 = smov %s2043_s16 }
 0x30b   : > { %s2902_s16 = smov %s2904_s27  ;;  %19 = sbr.rel (!%p17_p11) target bundleno = 7 (0x7), region = 85 }
 0x312   :  { %1388 = vsyncpa [#allocation3], 1 }
 0x313   :  { %1390 = vsyncpa [#allocation3 + $0x1], 1 }
 0x314   :  { %1391 = vsyncpa [#allocation6], 1 }
 0x315   :  { %1392 = vsyncpa [#allocation4], 1 }
 0x316   :  { %1394 = vsyncpa [#allocation4 + $0x1], 1 }

// kernel: tpu_custom_call.1
= control target key start
LH: loop header
LB: loop body
LE: loop exit
PB: predicated region body
PF: predicated region fallthrough
CT: control target
= control target key end

     0   :  { %8 = vsyncpa [#allocation3], 0  ;;  %s2871_s0 = inlined_call_operand.hbm [shape: bf16[2,256,256], index: 0, kind: input, shape index: {}]   ;;  %s2872_s1 = inlined_call_operand.hbm [shape: bf16[272,256], index: 1, kind: input, shape index: {}]   ;;  %s2873_s2 = inlined_call_operand.hbm [shape: bf16[32,136], index: 2, kind: input, shape index: {}]   ;;  %s2874_s3 = inlined_call_operand.hbm [shape: f32[2,32,256], index: 3, kind: output, shape index: {}]  }
   0x1   :  { %10 = vsyncpa [#allocation3 + $0x1], 0 }
   0x2   :  { %11 = vsyncpa [#allocation6], 0 }
   0x3   :  { %12 = vsyncpa [#allocation4], 0 }
   0x4   :  { %14 = vsyncpa [#allocation4 + $0x1], 0  ;;  %s2077_s12 = smov 0   ;;  %s2079_s13 = smov 0  }
   0x5   :  { %s2081_s14 = smov 0   ;;  %s2083_s15 = smov 0  }
   0x6   :  { %s2085_s16 = smov 0   ;;  %s2087_s17 = smov 0  }
   0x7 LB: > { %s1473_s18 = sadd.s32 4294967295, %s2047_s17   ;;  %s1474_s19 = sadd.s32 4294967294, %s2047_s17   ;;  %s2047_s17 = sphi %s2087_s17, %s20_s17   ;;  %s2043_s16 = sphi %s2085_s16, %s2902_s16   ;;  %s2039_s15 = sphi %s2083_s15, %s2901_s15   ;;  %s2035_s14 = sphi %s2081_s14, %s2900_s14   ;;  %s2031_s13 = sphi %s2079_s13, %s2899_s13   ;;  %s2027_s12 = sphi %s2077_s12, %s2898_s12  }
   0x8   : > { %p54_p0 = scmp.ne.s32.totalorder %s2031_s13, %s2027_s12  ;;  %p2111_p1 = scmp.eq.s32.totalorder %s1473_s18, 0 }
   0x9   : > { %p2115_p2 = scmp.eq.s32.totalorder %s1473_s18, 1  ;;  %p128_p3 = scmp.eq.s32.totalorder %s1474_s19, 1 }
   0xa   : > { %s2879_s20 = scalar_select %p2111_p1, 1, 0 }
   0xb   : > { %p2121_p4 = por %p2111_p1, %p54_p0  ;;  %p1475_p5 = scmp.ge.s32.totalorder %s2047_s17, 1 }
   0xc   : > { %p2126_p6 = por %p128_p3, %p54_p0  ;;  %p135_p7 = scmp.lt.s32.totalorder %s2047_s17, 3 }
   0xd   : > { %s2881_s22 = scalar_select %p2121_p4, 1, 0 }
   0xe   : > { %s2882_s23 = scalar_select %p2126_p6, 1, 0 }
   0xf   : > { %p2131_p8 = pnand %p1475_p5, %p135_p7  ;;  %s2049_s25 = smov [#allocation5]  }
  0x10   : > { %s147_s26 = sshll.u32 %s2049_s25, 4  ;;  %s2050_s28 = smov [#allocation7]   ;;  %s2135_s26 = int_to_ptr.vmem [resolvable:$true] %s147_s26 }
  0x11   : > { %p1611_p9 = pneg %p2131_p8  ;;  %s160_s29 = sshll.u32 %s2050_s28, 4  ;;  %s2146_s29 = int_to_ptr.vmem [resolvable:$true] %s160_s29 }
  0x12   : > { %s1875_s5 = scalar_lea.hbm %s2872_s1, 4352 }
  0x13   : > { %p2142_p11 = pnand %p1611_p9, %p2111_p1  ;;  %p1876_p12 = scmp.ne.s32.totalorder %s2872_s1, %s1875_s5 }
  0x14   : > { %p1882_p5 = scmp.lt.u32.totalorder %s1875_s5, %s2872_s1 }
  0x15   : > { %p1877_p13 = pneg %p2142_p11 }
  0x17   : > { %p1878_p0 = pnand %p1877_p13, %p1876_p12 }
  0x19   : > { %p1879_p3 = pneg %p1878_p0 }
  0x1b   : > { %p1884_p7 = pnand %p1882_p5, %p1879_p3 }
  0x1d   : > { %1887 = shalt.err (!%p1884_p7)
}
  0x1e   : > { %s1888_s10 = scalar_lea.vmem %s2135_s26, 4352  ;;  %p1896_p1 = scmp.lt.s32.totalorder %s2135_s26, %s2135_s26 }
  0x1f   : > { %p1889_p9 = scmp.ne.s32.totalorder %s2135_s26, %s1888_s10  ;;  %p1897_p12 = scmp.lt.s32.totalorder %s1888_s10, %s1888_s10 }
  0x21   : > { %p1891_p10 = pnand %p1889_p9, %p1877_p13  ;;  %p1898_p0 = por %p1897_p12, %p1896_p1 }
  0x23   : > { %p1892_p6 = pneg %p1891_p10 }
  0x25   : > { %p1899_p4 = pnand %p1898_p0, %p1892_p6 }
  0x27   : > { %1902 = shalt.err (!%p1899_p4)
}
  0x28   : > { %s2051_s11 = smov 128   ;;  %s2052_s18 = smov 8  }
  0x29   : > { %1614 = dma.hbm_to_vmem [thread:$0]  (!%p2142_p11), %s2872_s1, 4352, %s2135_s26, [#allocation6], %s2051_s11, %s2051_s11, %s2052_s18  }
  0x2a   : > { %s1903_s4 = scalar_lea.hbm %s2873_s2, 512 }
  0x2b   : > { %p1904_p1 = scmp.ne.s32.totalorder %s2873_s2, %s1903_s4  ;;  %p1910_p10 = scmp.lt.u32.totalorder %s1903_s4, %s2873_s2 }
  0x2d   : > { %p1906_p4 = pnand %p1904_p1, %p1877_p13 }
  0x2f   : > { %p1907_p6 = pneg %p1906_p4 }
  0x31   : > { %p1912_p3 = pnand %p1910_p10, %p1907_p6 }
  0x33   : > { %1915 = shalt.err (!%p1912_p3)
}
  0x34   : > { %s1916_s26 = scalar_lea.vmem %s2146_s29, 512  ;;  %p1924_p12 = scmp.lt.s32.totalorder %s2146_s29, %s2146_s29 }
  0x35   : > { %p1917_p5 = scmp.ne.s32.totalorder %s2146_s29, %s1916_s26  ;;  %p1925_p0 = scmp.lt.s32.totalorder %s1916_s26, %s1916_s26 }
  0x37   : > { %p1919_p7 = pnand %p1917_p5, %p1877_p13  ;;  %p1926_p1 = por %p1925_p0, %p1924_p12 }
  0x39   : > { %p1920_p9 = pneg %p1919_p7 }
  0x3b   : > { %p1927_p4 = pnand %p1926_p1, %p1920_p9 }
  0x3d   : > { %1930 = shalt.err (!%p1927_p4)
}
  0x3e   : > { %1617 = dma.hbm_to_vmem [thread:$0]  (!%p2142_p11), %s2873_s2, 512, %s2146_s29, [#allocation6], %s2051_s11, %s2051_s11, %s2052_s18  }
  0x3f   : > { %s32_s27 = sadd.s32 1, %s2043_s16  ;;  %s41_s19 = sadd.s32 1, %s2035_s14 }
  0x40   : > { %p34_p13 = scmp.ge.s32.totalorder %s32_s27, 2  ;;  %p48_p6 = scmp.ne.s32.totalorder %s2035_s14, %s2031_s13 }
  0x41   : > { %p49_p10 = scmp.eq.s32.totalorder %s2047_s17, 0  ;;  %p1628_p3 = scmp.lt.s32.totalorder %s2047_s17, 2 }
  0x42   : > { %s2904_s27 = smov (%p34_p13, %s32_s27), 0  ;;  %p2216_p7 = por %p2115_p2, %p48_p6 }
  0x43   : > { %p50_p5 = por %p49_p10, %p48_p6  ;;  %s36_s28 = ssub.s32 %s2043_s16, %s2904_s27 }
  0x44   : > { %s2885_s25 = scalar_select %p2216_p7, 1, 0 }
  0x45   : > { %s174_s30 = sand.u32 1, %s2035_s14   ;;  %p39_p9 = scmp.eq.s32.totalorder %s36_s28, 0 }
  0x46   : > { %s1479_s29 = sshll.u32 %s174_s30, 8  ;;  %s1565_s4 = sshll.u32 %s2043_s16, 12 }
  0x47   : > { %s2225_s5 = scalar_select %p39_p9, %s2035_s14, %s41_s19  }
  0x48   : > { %s2230_s8 = scalar_lea.hbm %s2871_s0, %s1565_s4  ;;  %s178_s21 = scalar_lea.vmem [#allocation2], %s1479_s29 }
  0x49   : > { %s187_s26 = sshll.u32 %s178_s21, 4  ;;  %p2234_p2 = pnand %p1628_p3, %p50_p5  ;;  %s2238_s26 = int_to_ptr.vmem [resolvable:$true] %s187_s26 }
  0x4a   : > { %s2240_s10 = scalar_lea.sflag [#allocation3], %s174_s30  ;;  %s1931_s19 = scalar_lea.hbm %s2230_s8, 4096 }
  0x4b   : > { %p1932_p11 = scmp.ne.s32.totalorder %s2230_s8, %s1931_s19  ;;  %p1933_p12 = pneg %p2234_p2 }
  0x4c   : > { %s1936_s4 = scalar_lea.hbm %s2871_s0, 8192  ;;  %p1937_p4 = scmp.lt.u32.totalorder %s2230_s8, %s2871_s0 }
  0x4d   : > { %p1934_p0 = pnand %p1933_p12, %p1932_p11  ;;  %p1938_p13 = scmp.lt.u32.totalorder %s1936_s4, %s1931_s19 }
  0x4e   : > { %p1940_p10 = scmp.lt.u32.totalorder %s1931_s19, %s2230_s8 }
  0x4f   : > { %p1935_p1 = pneg %p1934_p0  ;;  %p1939_p6 = por %p1938_p13, %p1937_p4 }
  0x51   : > { %p1941_p3 = por %p1940_p10, %p1939_p6 }
  0x53   : > { %p1942_p5 = pnand %p1941_p3, %p1935_p1 }
  0x55   : > { %1945 = shalt.err (!%p1942_p5)
}
  0x56   : > { %s1946_s30 = scalar_lea.vmem %s2238_s26, 4096  ;;  %s2053_s21 = smov [#allocation2]  }
  0x57   : > { %p1947_p9 = scmp.ne.s32.totalorder %s2238_s26, %s1946_s30  ;;  %s1951_s28 = sshll.u32 %s2053_s21, 4  ;;  %s1952_s28 = int_to_ptr.vmem [resolvable:$false] %s1951_s28 }
  0x58   : > { %s1953_s29 = scalar_lea.vmem %s1952_s28, 8192  ;;  %p1954_p7 = scmp.lt.s32.totalorder %s2238_s26, %s1952_s28 }
  0x59   : > { %p1949_p11 = pnand %p1947_p9, %p1933_p12  ;;  %p1955_p4 = scmp.lt.s32.totalorder %s1953_s29, %s1946_s30 }
  0x5b   : > { %p1950_p0 = pneg %p1949_p11  ;;  %p1956_p13 = por %p1955_p4, %p1954_p7 }
  0x5d   : > { %p1957_p6 = pnand %p1956_p13, %p1950_p0 }
  0x5f   : > { %1960 = shalt.err (!%p1957_p6)
}
  0x60   : > { %1621 = dma.hbm_to_vmem [thread:$0]  (!%p2234_p2), %s2230_s8, 4096, %s2238_s26, %s2240_s10, %s2051_s11, %s2051_s11, %s2052_s18  }
  0x61   : > { %199 = sbr.rel (%p2131_p8) target bundleno = 770 (0x302), region = 32  ;;  %s2274_s19 = sand.u32 (!%p2131_p8), 1, %s2031_s13  }
  0x62   : > { %s1483_s4 = sshll.u32 (!%p2131_p8), %s2274_s19, 8  ;;  %s202_s6 = scalar_lea.sflag (!%p2131_p8), [#allocation3], %s2274_s19 }
  0x63   : > { %s2278_s7 = scalar_lea.vmem (!%p2131_p8), [#allocation2], %s1483_s4  ;;  %p2887_p7 = scmp.ne.s32.totalorder (!%p2131_p8), %s2881_s22, 0 }
  0x68   : > { %2014 = dma.done.wait (%p2887_p7), %s202_s6, 4096  }
  0x69   : > { %2016 = vsyncadd (%p2887_p7), %s202_s6, 4294963200  ;;  %p2888_p2 = scmp.ne.s32.totalorder %s2879_s20, 0 }
  0x6b   : > { %2018 = dma.done.wait (%p2888_p2), [#allocation6], 4864  }
  0x6c   : > { %2020 = vsyncadd (%p2888_p2), [#allocation6], 4294962432  ;;  %v1686_v0 = vld [vmem:[%s2278_s7 + $0x4] ss:$8 sps:$4 sm:$0xff]   ;;  %v1688_v1 = vld [vmem:[%s2278_s7] ss:$8 sps:$4 sm:$0xff]  }
  0x6d   : > { %635 = vmatprep.subr.bf16.mxu0 %v1686_v0  ;;  %v1689_v2 = vld [vmem:[%s2278_s7 + $0x14] ss:$8 sps:$4 sm:$0xff]   ;;  %1567 = vmatprep.subr.bf16.mxu1 %v1686_v0  ;;  %v1691_v3 = vld [vmem:[%s2278_s7 + $0x10] ss:$8 sps:$4 sm:$0xff]   ;;  %v1692_v4 = vld [vmem:[%s2278_s7 + $0x24] ss:$8 sps:$4 sm:$0xff]  }
  0x6e   : > { %636 = vmatpush1.bf16.msra.mxu0 %v1688_v1  ;;  %1583 = vmatpush1.bf16.msra.mxu1 %v1688_v1  ;;  %v1694_v5 = vld [vmem:[%s2278_s7 + $0x20] ss:$8 sps:$4 sm:$0xff]   ;;  %v1695_v6 = vld [vmem:[%s2278_s7 + $0x34] ss:$8 sps:$4 sm:$0xff]   ;;  %v1697_v7 = vld [vmem:[%s2278_s7 + $0x30] ss:$8 sps:$4 sm:$0xff]  }
  0x6f   : > { %637 = vmatprep.subr.bf16.mxu0 %v1689_v2  ;;  %1568 = vmatprep.subr.bf16.mxu1 %v1689_v2  ;;  %v1698_v8 = vld [vmem:[%s2278_s7 + $0x44] ss:$8 sps:$4 sm:$0xff]   ;;  %v1700_v9 = vld [vmem:[%s2278_s7 + $0x40] ss:$8 sps:$4 sm:$0xff]   ;;  %v1701_v10 = vld [vmem:[%s2278_s7 + $0x54] ss:$8 sps:$4 sm:$0xff]  }
  0x70   : > { %v1703_v11 = vld [vmem:[%s2278_s7 + $0x50] ss:$8 sps:$4 sm:$0xff]   ;;  %v1704_v12 = vld [vmem:[%s2278_s7 + $0x64] ss:$8 sps:$4 sm:$0xff]   ;;  %v1706_v14 = vld [vmem:[%s2278_s7 + $0x60] ss:$8 sps:$4 sm:$0xff]  }
  0x71   : > { %v1736_v13 = vld [vmem:[#allocation5 + $0x4] ss:$8 sps:$4 sm:$0xff]   ;;  %v1707_v15 = vld [vmem:[%s2278_s7 + $0x74] ss:$8 sps:$4 sm:$0xff]   ;;  %v1709_v17 = vld [vmem:[%s2278_s7 + $0x70] ss:$8 sps:$4 sm:$0xff]  }
  0x72   : > { %638 = vmatpush1.bf16.msra.mxu0 %v1691_v3  ;;  %1584 = vmatpush1.bf16.msra.mxu1 %v1691_v3  ;;  %v1742_v16 = vld [vmem:[#allocation5 + $0xa4] ss:$8 sps:$4 sm:$0xff]   ;;  %v1712_v19 = vld [vmem:[%s2278_s7 + $0x80] ss:$8 sps:$4 sm:$0xff]   ;;  %v1713_v20 = vld [vmem:[%s2278_s7 + $0x94] ss:$8 sps:$4 sm:$0xff]  }
  0x73   : > { %639 = vmatprep.subr.bf16.mxu0 %v1692_v4  ;;  %1569 = vmatprep.subr.bf16.mxu1 %v1692_v4  ;;  %v1710_v18 = vld [vmem:[%s2278_s7 + $0x84] ss:$8 sps:$4 sm:$0xff]   ;;  %v1715_v21 = vld [vmem:[%s2278_s7 + $0x90] ss:$8 sps:$4 sm:$0xff]   ;;  %v1718_v23 = vld [vmem:[%s2278_s7 + $0xa0] ss:$8 sps:$4 sm:$0xff]  }
  0x74   : > { %667 = vmatprep.mubr.bf16.mxu0 %v1736_v13  ;;  %767 = vmatprep.mubr.bf16.mxu1 %v1742_v16  ;;  %v1716_v22 = vld [vmem:[%s2278_s7 + $0xa4] ss:$8 sps:$4 sm:$0xff]   ;;  %v1719_v24 = vld [vmem:[%s2278_s7 + $0xb4] ss:$8 sps:$4 sm:$0xff]   ;;  %v1721_v25 = vld [vmem:[%s2278_s7 + $0xb0] ss:$8 sps:$4 sm:$0xff]  }
  0x75   : > { %v1722_v26 = vld [vmem:[%s2278_s7 + $0xc4] ss:$8 sps:$4 sm:$0xff]   ;;  %v1724_v27 = vld [vmem:[%s2278_s7 + $0xc0] ss:$8 sps:$4 sm:$0xff]   ;;  %v1725_v28 = vld [vmem:[%s2278_s7 + $0xd4] ss:$8 sps:$4 sm:$0xff]  }
  0x76   : > { %640 = vmatpush1.bf16.msra.mxu0 %v1694_v5  ;;  %1585 = vmatpush1.bf16.msra.mxu1 %v1694_v5  ;;  %v1727_v29 = vld [vmem:[%s2278_s7 + $0xd0] ss:$8 sps:$4 sm:$0xff]   ;;  %v1728_v30 = vld [vmem:[%s2278_s7 + $0xe4] ss:$8 sps:$4 sm:$0xff]   ;;  %v1730_v31 = vld [vmem:[%s2278_s7 + $0xe0] ss:$8 sps:$4 sm:$0xff]  }
  0x77   : > { %641 = vmatprep.subr.bf16.mxu0 %v1695_v6  ;;  %1570 = vmatprep.subr.bf16.mxu1 %v1695_v6  ;;  %v1731_v32 = vld [vmem:[%s2278_s7 + $0xf4] ss:$8 sps:$4 sm:$0xff]   ;;  %v1733_v33 = vld [vmem:[%s2278_s7 + $0xf0] ss:$8 sps:$4 sm:$0xff]   ;;  %v1734_v34 = vld [vmem:[#allocation5] ss:$8 sps:$4 sm:$0xff]  }
  0x78   : > { %v1740_v35 = vld [vmem:[#allocation5 + $0xa0] ss:$8 sps:$4 sm:$0xff]   ;;  %v1737_v36 = vld [vmem:[#allocation5 + $0x14] ss:$8 sps:$4 sm:$0xff]   ;;  %v1739_v38 = vld [vmem:[#allocation5 + $0x10] ss:$8 sps:$4 sm:$0xff]  }
  0x79   : > { %v1746_v37 = vld [vmem:[#allocation5 + $0xb4] ss:$8 sps:$4 sm:$0xff]   ;;  %v1748_v39 = vld [vmem:[#allocation5 + $0xb0] ss:$8 sps:$4 sm:$0xff]   ;;  %v1743_v40 = vld [vmem:[#allocation5 + $0x24] ss:$8 sps:$4 sm:$0xff]  }
  0x7a   : > { %642 = vmatpush1.bf16.msra.mxu0 %v1697_v7  ;;  %1586 = vmatpush1.bf16.msra.mxu1 %v1697_v7  ;;  %v1752_v41 = vld [vmem:[#allocation5 + $0xc4] ss:$8 sps:$4 sm:$0xff]   ;;  %v1745_v42 = vld [vmem:[#allocation5 + $0x20] ss:$8 sps:$4 sm:$0xff]   ;;  %v1749_v44 = vld [vmem:[#allocation5 + $0x34] ss:$8 sps:$4 sm:$0xff]  }
  0x7b   : > { %643 = vmatprep.subr.bf16.mxu0 %v1698_v8  ;;  %1571 = vmatprep.subr.bf16.mxu1 %v1698_v8  ;;  %v1754_v43 = vld [vmem:[#allocation5 + $0xc0] ss:$8 sps:$4 sm:$0xff]   ;;  %v1758_v45 = vld [vmem:[#allocation5 + $0xd4] ss:$8 sps:$4 sm:$0xff]   ;;  %v1751_v46 = vld [vmem:[#allocation5 + $0x30] ss:$8 sps:$4 sm:$0xff]  }
  0x7c   : > { %v1760_v47 = vld [vmem:[#allocation5 + $0xd0] ss:$8 sps:$4 sm:$0xff]   ;;  %v1755_v48 = vld [vmem:[#allocation5 + $0x44] ss:$8 sps:$4 sm:$0xff]   ;;  %v1757_v50 = vld [vmem:[#allocation5 + $0x40] ss:$8 sps:$4 sm:$0xff]  }
  0x7d   : > { %v1764_v49 = vld [vmem:[#allocation5 + $0xe4] ss:$8 sps:$4 sm:$0xff]   ;;  %v1766_v51 = vld [vmem:[#allocation5 + $0xe0] ss:$8 sps:$4 sm:$0xff]   ;;  %v1761_v52 = vld [vmem:[#allocation5 + $0x54] ss:$8 sps:$4 sm:$0xff]  }
  0x7e   : > { %644 = vmatpush1.bf16.msra.mxu0 %v1700_v9  ;;  %1587 = vmatpush1.bf16.msra.mxu1 %v1700_v9  ;;  %v1770_v53 = vld [vmem:[#allocation5 + $0xf4] ss:$8 sps:$4 sm:$0xff]   ;;  %v1763_v54 = vld [vmem:[#allocation5 + $0x50] ss:$8 sps:$4 sm:$0xff]   ;;  %v1767_v56 = vld [vmem:[#allocation5 + $0x64] ss:$8 sps:$4 sm:$0xff]  }
  0x7f   : > { %645 = vmatprep.subr.bf16.mxu0 %v1701_v10  ;;  %1572 = vmatprep.subr.bf16.mxu1 %v1701_v10  ;;  %v1772_v55 = vld [vmem:[#allocation5 + $0xf0] ss:$8 sps:$4 sm:$0xff]   ;;  %v1776_v57 = vld [vmem:[#allocation5 + $0x104] ss:$8 sps:$4 sm:$0xff]   ;;  %v1769_v58 = vld [vmem:[#allocation5 + $0x60] ss:$8 sps:$4 sm:$0xff]  }
  0x80   : > { %v1778_v59 = vld [vmem:[#allocation5 + $0x100] ss:$8 sps:$4 sm:$0xff]   ;;  %v1773_v60 = vld [vmem:[#allocation5 + $0x74] ss:$8 sps:$4 sm:$0xff]   ;;  %v1775_v61 = vld [vmem:[#allocation5 + $0x70] ss:$8 sps:$4 sm:$0xff]  }
  0x81   : > { %v1779_v62 = vld [vmem:[#allocation5 + $0x84] ss:$8 sps:$4 sm:$0xff]   ;;  %v1781_v63 = vld [vmem:[#allocation5 + $0x80] ss:$8 sps:$4 sm:$0xff]   ;;  %v1782_v0 = vld [vmem:[#allocation5 + $0x94] ss:$8 sps:$4 sm:$0xff]  }
  0x82   : > { %646 = vmatpush1.bf16.msra.mxu0 %v1703_v11  ;;  %1588 = vmatpush1.bf16.msra.mxu1 %v1703_v11  ;;  %v1784_v1 = vld [vmem:[#allocation5 + $0x90] ss:$8 sps:$4 sm:$0xff]   ;;  %v1787_v8 = vld [vmem:[#allocation7 + $0x4] ss:$8 sps:$4 sm:$0xff]   ;;  %vm1252_vm0 = vcmask 64512   ;;  %s1486_s20 = sshll.u32 %s2274_s19, 6 }
  0x83   : > { %647 = vmatprep.subr.bf16.mxu0 %v1704_v12  ;;  %1573 = vmatprep.subr.bf16.mxu1 %v1704_v12  ;;  %s235_s22 = scalar_lea.vmem [#allocation8], %s1486_s20  ;;  %s1566_s24 = sshll.u32 %s2039_s15, 10 }
  0x84   : > { %s1367_s11 = sshll.u32 %s235_s22, 4  ;;  %s2820_s26 = scalar_lea.hbm %s2874_s3, %s1566_s24  ;;  %s2822_s11 = int_to_ptr.vmem [resolvable:$true] %s1367_s11 }
  0x85   : > { %s1352_s15 = scalar_lea.sflag [#allocation4], %s2274_s19  ;;  %s1961_s9 = scalar_lea.vmem %s2822_s11, 1024 }
  0x86   : > { %648 = vmatpush1.bf16.msra.mxu0 %v1706_v14  ;;  %1589 = vmatpush1.bf16.msra.mxu1 %v1706_v14  ;;  %p1962_p8 = scmp.ne.s32.totalorder %s2822_s11, %s1961_s9  ;;  %p2895_p12 = scmp.ne.s32.totalorder %s2885_s25, 0 }
  0x87   : > { %649 = vmatprep.subr.bf16.mxu0 %v1707_v15  ;;  %1574 = vmatprep.subr.bf16.mxu1 %v1707_v15  ;;  %s2054_s10 = smov [#allocation8]  }
  0x88   : > { %p1963_p1 = pnand %p1962_p8, %p2895_p12  ;;  %s1965_s30 = sshll.u32 %s2054_s10, 4  ;;  %s1966_s30 = int_to_ptr.vmem [resolvable:$false] %s1965_s30 }
  0x89   : > { %s1967_s21 = scalar_lea.vmem %s1966_s30, 2048  ;;  %p1968_p3 = scmp.lt.s32.totalorder %s2822_s11, %s1966_s30 }
  0x8a   : > { %650 = vmatpush1.bf16.msra.mxu0 %v1709_v17  ;;  %1590 = vmatpush1.bf16.msra.mxu1 %v1709_v17  ;;  %p1964_p10 = pneg %p1963_p1  ;;  %p1969_p5 = scmp.lt.s32.totalorder %s1967_s21, %s1961_s9 }
  0x8b   : > { %651 = vmatprep.subr.bf16.mxu0 %v1710_v18  ;;  %1575 = vmatprep.subr.bf16.mxu1 %v1710_v18 }
  0x8c   : > { %p1970_p9 = por %p1969_p5, %p1968_p3 }
  0x8e   : > { %652 = vmatpush1.bf16.msra.mxu0 %v1712_v19  ;;  %1591 = vmatpush1.bf16.msra.mxu1 %v1712_v19  ;;  %p1971_p11 = pnand %p1970_p9, %p1964_p10 }
  0x8f   : > { %653 = vmatprep.subr.bf16.mxu0 %v1713_v20  ;;  %1576 = vmatprep.subr.bf16.mxu1 %v1713_v20 }
  0x92   : > { %654 = vmatpush1.bf16.msra.mxu0 %v1715_v21  ;;  %1592 = vmatpush1.bf16.msra.mxu1 %v1715_v21 }
  0x93   : > { %655 = vmatprep.subr.bf16.mxu0 %v1716_v22  ;;  %1577 = vmatprep.subr.bf16.mxu1 %v1716_v22 }
  0x96   : > { %656 = vmatpush1.bf16.msra.mxu0 %v1718_v23  ;;  %1593 = vmatpush1.bf16.msra.mxu1 %v1718_v23 }
  0x97   : > { %657 = vmatprep.subr.bf16.mxu0 %v1719_v24  ;;  %1578 = vmatprep.subr.bf16.mxu1 %v1719_v24 }
  0x9a   : > { %658 = vmatpush1.bf16.msra.mxu0 %v1721_v25  ;;  %1594 = vmatpush1.bf16.msra.mxu1 %v1721_v25 }
  0x9b   : > { %659 = vmatprep.subr.bf16.mxu0 %v1722_v26  ;;  %1579 = vmatprep.subr.bf16.mxu1 %v1722_v26 }
  0x9e   : > { %660 = vmatpush1.bf16.msra.mxu0 %v1724_v27  ;;  %1595 = vmatpush1.bf16.msra.mxu1 %v1724_v27 }
  0x9f   : > { %661 = vmatprep.subr.bf16.mxu0 %v1725_v28  ;;  %1580 = vmatprep.subr.bf16.mxu1 %v1725_v28 }
  0xa2   : > { %662 = vmatpush1.bf16.msra.mxu0 %v1727_v29  ;;  %1596 = vmatpush1.bf16.msra.mxu1 %v1727_v29 }
  0xa3   : > { %663 = vmatprep.subr.bf16.mxu0 %v1728_v30  ;;  %1581 = vmatprep.subr.bf16.mxu1 %v1728_v30 }
  0xa6   : > { %664 = vmatpush1.bf16.msra.mxu0 %v1730_v31  ;;  %1597 = vmatpush1.bf16.msra.mxu1 %v1730_v31 }
  0xa7   : > { %665 = vmatprep.subr.bf16.mxu0 %v1731_v32  ;;  %1582 = vmatprep.subr.bf16.mxu1 %v1731_v32 }
  0xaa   : > { %666 = vmatpush1.bf16.msra.mxu0 %v1733_v33  ;;  %1598 = vmatpush1.bf16.msra.mxu1 %v1733_v33 }
  0xad   : > { %668 = vmatmul.mubr.bf16.vlgmr.msra.gmra.mrb[0].mxu0 %v1734_v34  ;;  %768 = vmatmul.mubr.bf16.vlgmr.msra.gmra.mrb[0].mxu1 %v1740_v35 }
  0xae   : > { %677 = vmatprep.mubr.bf16.mxu0 %v1737_v36  ;;  %777 = vmatprep.mubr.bf16.mxu1 %v1746_v37 }
  0xb5   : > { %678 = vmatmul.mubr.bf16.gmra.mrb[4].mxu0 %v1739_v38  ;;  %778 = vmatmul.mubr.bf16.gmra.mrb[4].mxu1 %v1748_v39 }
  0xb6   : > { %687 = vmatprep.mubr.bf16.mxu0 %v1743_v40  ;;  %787 = vmatprep.mubr.bf16.mxu1 %v1752_v41 }
  0xbd   : > { %688 = vmatmul.mubr.bf16.gmra.mrb[8].mxu0 %v1745_v42  ;;  %788 = vmatmul.mubr.bf16.gmra.mrb[8].mxu1 %v1754_v43 }
  0xbe   : > { %697 = vmatprep.mubr.bf16.mxu0 %v1749_v44  ;;  %797 = vmatprep.mubr.bf16.mxu1 %v1758_v45 }
  0xc5   : > { %698 = vmatmul.mubr.bf16.gmra.mrb[12].mxu0 %v1751_v46  ;;  %798 = vmatmul.mubr.bf16.gmra.mrb[12].mxu1 %v1760_v47 }
  0xc6   : > { %707 = vmatprep.mubr.bf16.mxu0 %v1755_v48  ;;  %807 = vmatprep.mubr.bf16.mxu1 %v1764_v49 }
  0xcd   : > { %708 = vmatmul.mubr.bf16.gmra.mrb[16].mxu0 %v1757_v50  ;;  %808 = vmatmul.mubr.bf16.gmra.mrb[16].mxu1 %v1766_v51 }
  0xce   : > { %717 = vmatprep.mubr.bf16.mxu0 %v1761_v52  ;;  %817 = vmatprep.mubr.bf16.mxu1 %v1770_v53 }
  0xd5   : > { %718 = vmatmul.mubr.bf16.gmra.mrb[20].mxu0 %v1763_v54  ;;  %818 = vmatmul.mubr.bf16.gmra.mrb[20].mxu1 %v1772_v55 }
  0xd6   : > { %727 = vmatprep.mubr.bf16.mxu0 %v1767_v56  ;;  %827 = vmatprep.mubr.bf16.mxu1 %v1776_v57 }
  0xdd   : > { %728 = vmatmul.mubr.bf16.gmra.mrb[24].mxu0 %v1769_v58  ;;  %828 = vmatmul.mubr.bf16.gmra.mrb[24].mxu1 %v1778_v59 }
  0xde   : > { %737 = vmatprep.mubr.bf16.mxu0 %v1773_v60  ;;  %1558 = vmatprep.mubr.msk.bf16.mxu1 %vm1252_vm0, %v1787_v8 }
  0xe5   : > { %738 = vmatmul.mubr.bf16.gmra.mrb[28].mxu0 %v1775_v61 }
  0xe6   : > { %747 = vmatprep.mubr.bf16.mxu0 %v1779_v62 }
  0xed   : > { %748 = vmatmul.mubr.bf16.gmra.mrb[32].mxu0 %v1781_v63 }
  0xee   : > { %757 = vmatprep.mubr.bf16.mxu0 %v1782_v0 }
  0xf5   : > { %758 = vmatmul.mubr.bf16.gmra.mrb[36].mxu0 %v1784_v1 }
 0x180   : > { %v669_v2 = vpop.f32.mrb[0].mxu0  ;;  %v769_v3 = vpop.f32.mrb[0].mxu1 }
 0x181   : > { %v671_v4 = vpop.f32.mrb[1].mxu0  ;;  %v771_v5 = vpop.f32.mrb[1].mxu1  ;;  %v878_v14 = vmul.f32 %v769_v3, %v769_v3  ;;  %v2327_v45 = vmul.f32 %v669_v2, %v669_v2 }
 0x182   : > { %v673_v6 = vpop.f32.mrb[2].mxu0  ;;  %v773_v7 = vpop.f32.mrb[2].mxu1  ;;  %v879_v17 = vmul.f32 %v771_v5, %v771_v5  ;;  %v2331_v48 = vmul.f32 %v671_v4, %v671_v4 }
 0x183   : > { %v675_v9 = vpop.f32.mrb[3].mxu0  ;;  %v775_v10 = vpop.f32.mrb[3].mxu1  ;;  %v880_v26 = vmul.f32 %v773_v7, %v773_v7  ;;  %v2333_v49 = vmul.f32 %v673_v6, %v673_v6 }
 0x184   : > { %v881_v29 = vmul.f32 %v775_v10, %v775_v10  ;;  %v2337_v52 = vmul.f32 %v675_v9, %v675_v9 }
 0x188   : > { %v679_v11 = vpop.f32.mrb[4].mxu0  ;;  %v779_v12 = vpop.f32.mrb[4].mxu1 }
 0x189   : > { %v681_v13 = vpop.f32.mrb[5].mxu0  ;;  %v781_v15 = vpop.f32.mrb[5].mxu1  ;;  %v882_v33 = vmul.f32 %v779_v12, %v779_v12  ;;  %v2342_v55 = vmul.f32 %v679_v11, %v679_v11 }
 0x18a   : > { %v683_v16 = vpop.f32.mrb[6].mxu0  ;;  %v783_v18 = vpop.f32.mrb[6].mxu1  ;;  %v883_v37 = vmul.f32 %v781_v15, %v781_v15  ;;  %v2347_v60 = vmul.f32 %v681_v13, %v681_v13 }
 0x18b   : > { %v844_v19 = vmul.f32 %v683_v16, %v683_v16  ;;  %v685_v20 = vpop.f32.mrb[7].mxu0  ;;  %v785_v21 = vpop.f32.mrb[7].mxu1  ;;  %v884_v54 = vmul.f32 %v783_v18, %v783_v18 }
 0x18c   : > { %v845_v22 = vmul.f32 %v685_v20, %v685_v20  ;;  %v885_v58 = vmul.f32 %v785_v21, %v785_v21 }
 0x18d   : > { %v912_v23 = vadd.f32 %v878_v14, %v844_v19 }
 0x18e   : > { %v913_v24 = vadd.f32 %v879_v17, %v845_v22 }
 0x18f   : > { %v2321_v25 = vadd.f32 1e-09, %v912_v23 }
 0x190   : > { %v2323_v27 = vadd.f32 1e-09, %v913_v24  ;;  %v689_v28 = vpop.f32.mrb[8].mxu0  ;;  %v789_v30 = vpop.f32.mrb[8].mxu1 }
 0x191   : > { %1791 = vrsqrt.f32 %v2321_v25  ;;  %v846_v31 = vmul.f32 %v689_v28, %v689_v28  ;;  %v691_v32 = vpop.f32.mrb[9].mxu0  ;;  %v791_v34 = vpop.f32.mrb[9].mxu1  ;;  %v886_v63 = vmul.f32 %v789_v30, %v789_v30  ;;  %vm1018_vm1 = vcmp.eq.f32.partialorder %v2321_v25, inf }
 0x192   : > { %v847_v35 = vmul.f32 %v691_v32, %v691_v32  ;;  %v693_v36 = vpop.f32.mrb[10].mxu0  ;;  %v793_v38 = vpop.f32.mrb[10].mxu1  ;;  %1793 = vrsqrt.f32 %v2323_v27  ;;  %v887_v3 = vmul.f32 %v791_v34, %v791_v34  ;;  %vm1025_vm2 = vcmp.eq.f32.partialorder %v2323_v27, inf }
 0x193   : > { %v914_v39 = vadd.f32 %v880_v26, %v846_v31  ;;  %v848_v40 = vmul.f32 %v693_v36, %v693_v36  ;;  %v695_v41 = vpop.f32.mrb[11].mxu0  ;;  %v795_v42 = vpop.f32.mrb[11].mxu1  ;;  %v888_v9 = vmul.f32 %v793_v38, %v793_v38  ;;  %v1028_v14 = vand.u32 2147483648, %v2323_v27 }
 0x194   : > { %v915_v43 = vadd.f32 %v881_v29, %v847_v35  ;;  %v849_v44 = vmul.f32 %v695_v41, %v695_v41  ;;  %v889_v10 = vmul.f32 %v795_v42, %v795_v42  ;;  %v1021_v15 = vand.u32 2147483648, %v2321_v25 }
 0x195   : > { %v2329_v46 = vadd.f32 1e-09, %v914_v39  ;;  %v916_v47 = vadd.f32 %v882_v33, %v848_v40 }
 0x196   : > { %v2335_v50 = vadd.f32 1e-09, %v915_v43  ;;  %v917_v51 = vadd.f32 %v883_v37, %v849_v44 }
 0x197   : > { %1795 = vrsqrt.f32 %v2329_v46  ;;  %v2340_v53 = vadd.f32 1e-09, %v916_v47  ;;  %vm1032_vm4 = vcmp.eq.f32.partialorder %v2329_v46, inf  ;;  %vm1034_vm8 = vcmp.eq.f32.partialorder %v2329_v46, 0.0 }
 0x198   : > { %1797 = vrsqrt.f32 %v2335_v50  ;;  %v2345_v56 = vadd.f32 1e-09, %v917_v51  ;;  %v699_v57 = vpop.f32.mrb[12].mxu0  ;;  %v799_v59 = vpop.f32.mrb[12].mxu1  ;;  %vm1039_vm3 = vcmp.eq.f32.partialorder %v2335_v50, inf  ;;  %v1042_v23 = vand.u32 2147483648, %v2335_v50 }
 0x199   : > { %1799 = vrsqrt.f32 %v2340_v53  ;;  %v850_v61 = vmul.f32 %v699_v57, %v699_v57  ;;  %v701_v62 = vpop.f32.mrb[13].mxu0  ;;  %v801_v0 = vpop.f32.mrb[13].mxu1  ;;  %v890_v19 = vmul.f32 %v799_v59, %v799_v59  ;;  %vm1041_vm5 = vcmp.eq.f32.partialorder %v2335_v50, 0.0 }
 0x19a   : > { %1801 = vrsqrt.f32 %v2345_v56  ;;  %v851_v1 = vmul.f32 %v701_v62, %v701_v62  ;;  %v703_v2 = vpop.f32.mrb[14].mxu0  ;;  %v803_v4 = vpop.f32.mrb[14].mxu1  ;;  %v891_v24 = vmul.f32 %v801_v0, %v801_v0  ;;  %vm1053_vm6 = vcmp.eq.f32.partialorder %v2345_v56, inf }
 0x19b   : > { %v1792_v5 = vpop.eup %1791  ;;  %v918_v6 = vadd.f32 %v884_v54, %v850_v61  ;;  %v852_v7 = vmul.f32 %v703_v2, %v703_v2  ;;  %v705_v8 = vpop.f32.mrb[15].mxu0  ;;  %v2363_v26 = vmul.f32 %v803_v4, %v803_v4  ;;  %vm1055_vm7 = vcmp.eq.f32.partialorder %v2345_v56, 0.0 }
 0x19c   : > { %v805_v11 = vpop.f32.mrb[15].mxu1  ;;  %v919_v12 = vadd.f32 %v885_v58, %v851_v1  ;;  %v853_v13 = vmul.f32 %v705_v8, %v705_v8  ;;  %v1794_v16 = vpop.eup %1793  ;;  %v1017_v22 = vmul.f32 %v1792_v5, %v2321_v25  ;;  %v1056_v38 = vand.u32 2147483648, %v2345_v56 }
 0x19d   : > { %v2355_v17 = vadd.f32 1e-09, %v918_v6  ;;  %v920_v18 = vadd.f32 %v886_v63, %v852_v7  ;;  %v2371_v30 = vmul.f32 %v805_v11, %v805_v11  ;;  %v1024_v32 = vmul.f32 %v1794_v16, %v2323_v27 }
 0x19e   : > { %v2358_v20 = vadd.f32 1e-09, %v919_v12  ;;  %v921_v21 = vadd.f32 %v887_v3, %v853_v13  ;;  %v2383_v43 = vsel %vm1018_vm1, %v2321_v25, %v1017_v22  ;;  %v1035_v44 = vand.u32 2147483648, %v2329_v46 }
 0x19f   : > { %1803 = vrsqrt.f32 %v2355_v17  ;;  %v2375_v34 = vadd.f32 1e-09, %v920_v18  ;;  %v2391_v1 = vsel %vm1025_vm2, %v2323_v27, %v1024_v32  ;;  %vm1046_vm9 = vcmp.eq.f32.partialorder %v2340_v53, inf }
 0x1a0   : > { %v2369_v28 = vadd.f32 1e-09, %v921_v21  ;;  %v709_v29 = vpop.f32.mrb[16].mxu0  ;;  %v809_v31 = vpop.f32.mrb[16].mxu1  ;;  %1805 = vrsqrt.f32 %v2358_v20  ;;  %vm1048_vm10 = vcmp.eq.f32.partialorder %v2340_v53, 0.0  ;;  %vm1067_vm11 = vcmp.eq.f32.partialorder %v2358_v20, inf }
 0x1a1   : > { %v1796_v33 = vpop.eup %1795  ;;  %v854_v35 = vmul.f32 %v709_v29, %v709_v29  ;;  %v711_v36 = vpop.f32.mrb[17].mxu0  ;;  %v894_v7 = vmul.f32 %v809_v31, %v809_v31  ;;  %vm1069_vm12 = vcmp.eq.f32.partialorder %v2358_v20, 0.0  ;;  %vm1060_vm15 = vcmp.eq.f32.partialorder %v2355_v17, inf }
 0x1a2   : > { %v811_v37 = vpop.f32.mrb[17].mxu1  ;;  %v1798_v39 = vpop.eup %1797  ;;  %1807 = vrsqrt.f32 %v2369_v28  ;;  %v855_v40 = vmul.f32 %v711_v36, %v711_v36  ;;  %v1031_v61 = vmul.f32 %v1796_v33, %v2329_v46  ;;  %v1049_v33 = vand.u32 2147483648, %v2340_v53 }
 0x1a3   : > { %v713_v41 = vpop.f32.mrb[18].mxu0  ;;  %v813_v42 = vpop.f32.mrb[18].mxu1  ;;  %v922_v51 = vadd.f32 %v888_v9, %v854_v35  ;;  %v1038_v59 = vmul.f32 %v1798_v39, %v2335_v50  ;;  %1809 = vrsqrt.f32 %v2375_v34  ;;  %v895_v8 = vmul.f32 %v811_v37, %v811_v37 }
 0x1a4   : > { %v1800_v47 = vpop.eup %1799  ;;  %v856_v54 = vmul.f32 %v713_v41, %v713_v41  ;;  %v715_v57 = vpop.f32.mrb[19].mxu0  ;;  %v923_v63 = vadd.f32 %v889_v10, %v855_v40  ;;  %v1033_v10 = vsel %vm1032_vm4, %v2329_v46, %v1031_v61  ;;  %v896_v16 = vmul.f32 %v813_v42, %v813_v42 }
 0x1a5   : > { %v815_v58 = vpop.f32.mrb[19].mxu1  ;;  %v1802_v62 = vpop.eup %1801  ;;  %v857_v0 = vmul.f32 %v715_v57, %v715_v57  ;;  %v1040_v3 = vsel %vm1039_vm3, %v2335_v50, %v1038_v59  ;;  %v2399_v5 = vadd.f32 1e-09, %v922_v51  ;;  %v1045_v11 = vmul.f32 %v1800_v47, %v2340_v53 }
 0x1a6   : > { %v924_v2 = vadd.f32 %v890_v19, %v856_v54  ;;  %v1052_v4 = vmul.f32 %v1802_v62, %v2345_v56  ;;  %v2409_v12 = vadd.f32 1e-09, %v923_v63  ;;  %v2413_v19 = vsel %vm1041_vm5, %v1042_v23, %v1040_v3 }
 0x1a7   : > { %v925_v6 = vadd.f32 %v891_v24, %v857_v0  ;;  %1811 = vrsqrt.f32 %v2399_v5  ;;  %v1047_v37 = vsel %vm1046_vm9, %v2340_v53, %v1045_v11  ;;  %v897_v61 = vmul.f32 %v815_v58, %v815_v58 }
 0x1a8   : > { %v1054_v9 = vsel %vm1053_vm6, %v2345_v56, %v1052_v4  ;;  %v719_v13 = vpop.f32.mrb[20].mxu0  ;;  %v819_v18 = vpop.f32.mrb[20].mxu1  ;;  %v2419_v22 = vadd.f32 1e-09, %v924_v2  ;;  %v2427_v56 = vsel %vm1034_vm8, %v1035_v44, %v1033_v10  ;;  %v2437_v51 = vsel %vm1048_vm10, %v1049_v33, %v1047_v37 }
 0x1a9   : > { %v2417_v21 = vsel %vm1055_vm7, %v1056_v38, %v1054_v9  ;;  %v858_v24 = vmul.f32 %v719_v13, %v719_v13  ;;  %v721_v29 = vpop.f32.mrb[21].mxu0  ;;  %v821_v31 = vpop.f32.mrb[21].mxu1  ;;  %v2432_v39 = vadd.f32 1e-09, %v925_v6  ;;  %1813 = vrsqrt.f32 %v2409_v12 }
 0x1aa   : > { %v1221_v32 = vpack.c.bf16 %v2417_v21, %v2413_v19  ;;  %v1804_v35 = vpop.eup %1803  ;;  %v859_v50 = vmul.f32 %v721_v29, %v721_v29  ;;  %v723_v23 = vpop.f32.mrb[22].mxu0  ;;  %1815 = vrsqrt.f32 %v2419_v22  ;;  %v898_v63 = vmul.f32 %v819_v18, %v819_v18 }
 0x1ab   : > { %v823_v36 = vpop.f32.mrb[22].mxu1  ;;  %v1806_v38 = vpop.eup %1805  ;;  %v926_v40 = vadd.f32 %v2363_v26, %v858_v24  ;;  %v860_v41 = vmul.f32 %v723_v23, %v723_v23  ;;  %1817 = vrsqrt.f32 %v2432_v39  ;;  %v1070_v58 = vand.u32 2147483648, %v2358_v20 }
 0x1ac   : > { %v725_v42 = vpop.f32.mrb[23].mxu0  ;;  %v825_v47 = vpop.f32.mrb[23].mxu1  ;;  %v927_v46 = vadd.f32 %v2371_v30, %v859_v50  ;;  %v1066_v0 = vmul.f32 %v1806_v38, %v2358_v20  ;;  %v899_v30 = vmul.f32 %v821_v31, %v821_v31  ;;  %v900_v3 = vmul.f32 %v823_v36, %v823_v36 }
 0x1ad   : > { %v1808_v54 = vpop.eup %1807  ;;  %v861_v44 = vmul.f32 %v725_v42, %v725_v42  ;;  %v2444_v59 = vadd.f32 1e-09, %v926_v40  ;;  %v928_v26 = vadd.f32 %v894_v7, %v860_v41  ;;  %v2451_v9 = vmul.f32 %v825_v47, %v825_v47 }
 0x1ae   : > { %v2446_v62 = vadd.f32 1e-09, %v927_v46  ;;  %v1810_v2 = vpop.eup %1809  ;;  %v1080_v4 = vmul.f32 %v1808_v54, %v2369_v28  ;;  %vm1081_vm13 = vcmp.eq.f32.partialorder %v2369_v28, inf  ;;  %v1068_v31 = vsel %vm1067_vm11, %v2358_v20, %v1066_v0 }
 0x1af   : > { %v929_v53 = vadd.f32 %v895_v8, %v861_v44  ;;  %1819 = vrsqrt.f32 %v2444_v59  ;;  %v2457_v7 = vadd.f32 1e-09, %v928_v26  ;;  %v1084_v40 = vand.u32 2147483648, %v2369_v28 }
 0x1b0   : > { %v729_v6 = vpop.f32.mrb[24].mxu0  ;;  %v829_v10 = vpop.f32.mrb[24].mxu1  ;;  %1821 = vrsqrt.f32 %v2446_v62  ;;  %v1082_v33 = vsel %vm1081_vm13, %v2369_v28, %v1080_v4  ;;  %vm1083_vm14 = vcmp.eq.f32.partialorder %v2369_v28, 0.0  ;;  %v1059_v54 = vmul.f32 %v1804_v35, %v2355_v17 }
 0x1b1   : > { %v862_v8 = vmul.f32 %v729_v6, %v729_v6  ;;  %v731_v11 = vpop.f32.mrb[25].mxu0  ;;  %v831_v13 = vpop.f32.mrb[25].mxu1  ;;  %v2463_v50 = vadd.f32 1e-09, %v929_v53  ;;  %v2474_v26 = vsel %vm1069_vm12, %v1070_v58, %v1068_v31  ;;  %1823 = vrsqrt.f32 %v2457_v7 }
 0x1b2   : > { %v863_v18 = vmul.f32 %v731_v11, %v731_v11  ;;  %v733_v24 = vpop.f32.mrb[26].mxu0  ;;  %v833_v29 = vpop.f32.mrb[26].mxu1  ;;  %v902_v4 = vmul.f32 %v829_v10, %v829_v10  ;;  %v1073_v10 = vmul.f32 %v1810_v2, %v2375_v34  ;;  %vm1062_vm1 = vcmp.eq.f32.partialorder %v2355_v17, 0.0 }
 0x1b3   : > { %v930_v23 = vadd.f32 %v896_v16, %v862_v8  ;;  %v864_v36 = vmul.f32 %v733_v24, %v733_v24  ;;  %v735_v37 = vpop.f32.mrb[27].mxu0  ;;  %v835_v38 = vpop.f32.mrb[27].mxu1  ;;  %v2476_v16 = vsel %vm1083_vm14, %v1084_v40, %v1082_v33  ;;  %1825 = vrsqrt.f32 %v2463_v50 }
 0x1b4   : > { %v2466_v41 = vpop.eup %1811  ;;  %v931_v42 = vadd.f32 %v897_v61, %v863_v18  ;;  %v865_v47 = vmul.f32 %v735_v37, %v735_v37  ;;  %v1063_v18 = vand.u32 2147483648, %v2355_v17  ;;  %vm1074_vm2 = vcmp.eq.f32.partialorder %v2375_v34, inf }
 0x1b5   : > { %v2470_v46 = vadd.f32 1e-09, %v930_v23  ;;  %v932_v44 = vadd.f32 %v898_v63, %v864_v36  ;;  %v1814_v53 = vpop.eup %1813  ;;  %v903_v63 = vmul.f32 %v831_v13, %v831_v13  ;;  %v1075_v33 = vsel %vm1074_vm2, %v2375_v34, %v1073_v10 }
 0x1b6   : > { %v933_v0 = vadd.f32 %v899_v30, %v865_v47  ;;  %v2481_v28 = vpop.eup %1815  ;;  %v2484_v35 = vadd.f32 1e-09, %v931_v42  ;;  %v1061_v30 = vsel %vm1060_vm15, %v2355_v17, %v1059_v54  ;;  %v1077_v23 = vand.u32 2147483648, %v2375_v34 }
 0x1b7   : > { %1827 = vrsqrt.f32 %v2470_v46  ;;  %v2488_v20 = vadd.f32 1e-09, %v932_v44  ;;  %v1818_v58 = vpop.eup %1817  ;;  %v2501_v42 = vsel %vm1062_vm1, %v1063_v18, %v1061_v30  ;;  %vm1076_vm3 = vcmp.eq.f32.partialorder %v2375_v34, 0.0 }
 0x1b8   : > { %v739_v6 = vpop.f32.mrb[28].mxu0  ;;  %v2495_v13 = vadd.f32 1e-09, %v933_v0  ;;  %v2507_v44 = vsel %vm1076_vm3, %v1077_v23, %v1075_v33  ;;  %v1094_v0 = vmul.f32 %v1814_v53, %v2409_v12  ;;  %1829 = vrsqrt.f32 %v2484_v35 }
 0x1b9   : > { %v866_v8 = vmul.f32 %v739_v6, %v739_v6  ;;  %v741_v11 = vpop.f32.mrb[29].mxu0  ;;  %v2499_v36 = vpop.eup %1819  ;;  %vm1027_vm4 = vcmp.eq.f32.partialorder %v2323_v27, 0.0  ;;  %1831 = vrsqrt.f32 %v2488_v20  ;;  %v904_v10 = vmul.f32 %v833_v29, %v833_v29 }
 0x1ba   : > { %v867_v24 = vmul.f32 %v741_v11, %v741_v11  ;;  %v743_v31 = vpop.f32.mrb[30].mxu0  ;;  %v2504_v17 = vpop.eup %1821  ;;  %1833 = vrsqrt.f32 %v2495_v13  ;;  %vm1095_vm5 = vcmp.eq.f32.partialorder %v2409_v12, inf  ;;  %vm1109_vm6 = vcmp.eq.f32.partialorder %v2432_v39, inf }
 0x1bb   : > { %v934_v2 = vadd.f32 %v900_v3, %v866_v8  ;;  %v868_v37 = vmul.f32 %v743_v31, %v743_v31  ;;  %v745_v40 = vpop.f32.mrb[31].mxu0  ;;  %v905_v8 = vmul.f32 %v835_v38, %v835_v38  ;;  %v2521_v53 = vpop.eup %1823  ;;  %v1096_v18 = vsel %vm1095_vm5, %v2409_v12, %v1094_v0 }
 0x1bc   : > { %v935_v47 = vadd.f32 %v2451_v9, %v867_v24  ;;  %v869_v54 = vmul.f32 %v745_v40, %v745_v40  ;;  %v1108_v9 = vmul.f32 %v1818_v58, %v2432_v39  ;;  %vm1097_vm7 = vcmp.eq.f32.partialorder %v2409_v12, 0.0 }
 0x1bd   : > { %v2511_v6 = vadd.f32 1e-09, %v934_v2  ;;  %v936_v3 = vadd.f32 %v902_v4, %v868_v37  ;;  %v1098_v24 = vand.u32 2147483648, %v2409_v12  ;;  %v1112_v31 = vand.u32 2147483648, %v2432_v39 }
 0x1be   : > { %v937_v34 = vadd.f32 %v903_v63, %v869_v54  ;;  %v2523_v4 = vadd.f32 1e-09, %v935_v47  ;;  %v1110_v29 = vsel %vm1109_vm6, %v2432_v39, %v1108_v9  ;;  %v2528_v63 = vpop.eup %1825  ;;  %vm1111_vm8 = vcmp.eq.f32.partialorder %v2432_v39, 0.0 }
 0x1bf   : > { %1835 = vrsqrt.f32 %v2511_v6  ;;  %v2535_v23 = vadd.f32 1e-09, %v936_v3  ;;  %v2542_v9 = vsel %vm1097_vm7, %v1098_v24, %v1096_v18  ;;  %vm1020_vm9 = vcmp.eq.f32.partialorder %v2321_v25, 0.0 }
 0x1c0   : > { %v749_v11 = vpop.f32.mrb[32].mxu0  ;;  %v2537_v2 = vadd.f32 1e-09, %v937_v34  ;;  %v1087_v34 = vmul.f32 %v2466_v41, %v2399_v5  ;;  %1837 = vrsqrt.f32 %v2523_v4  ;;  %v1101_v12 = vmul.f32 %v2481_v28, %v2419_v22 }
 0x1c1   : > { %v870_v38 = vmul.f32 %v749_v11, %v749_v11  ;;  %v751_v58 = vpop.f32.mrb[33].mxu0  ;;  %v2533_v33 = vpop.eup %1827  ;;  %v2544_v11 = vsel %vm1111_vm8, %v1112_v31, %v1110_v29  ;;  %1839 = vrsqrt.f32 %v2535_v23  ;;  %vm1088_vm10 = vcmp.eq.f32.partialorder %v2399_v5, inf }
 0x1c2   : > { %v871_v37 = vmul.f32 %v751_v58, %v751_v58  ;;  %v753_v40 = vpop.f32.mrb[34].mxu0  ;;  %v2569_v41 = vpop.eup %1829  ;;  %1841 = vrsqrt.f32 %v2537_v2  ;;  %v1089_v25 = vsel %vm1088_vm10, %v2399_v5, %v1087_v34  ;;  %vm1102_vm11 = vcmp.eq.f32.partialorder %v2419_v22, inf }
 0x1c3   : > { %v938_v47 = vadd.f32 %v904_v10, %v870_v38  ;;  %v872_v54 = vmul.f32 %v753_v40, %v753_v40  ;;  %v755_v0 = vpop.f32.mrb[35].mxu0  ;;  %v1103_v38 = vsel %vm1102_vm11, %v2419_v22, %v1101_v12  ;;  %vm1090_vm12 = vcmp.eq.f32.partialorder %v2399_v5, 0.0 }
 0x1c4   : > { %v939_v30 = vadd.f32 %v905_v8, %v871_v37  ;;  %v873_v61 = vmul.f32 %v755_v0, %v755_v0  ;;  %v2562_v8 = vsel %vm1027_vm4, %v1028_v14, %v2391_v1  ;;  %v1105_v31 = vand.u32 2147483648, %v2419_v22 }
 0x1c5   : > { %v906_v39 = vadd.f32 %v872_v54, %v2327_v45  ;;  %v2567_v45 = vsel %vm1020_vm9, %v1021_v15, %v2383_v43  ;;  %v2578_v27 = vadd.f32 1e-09, %v938_v47  ;;  %vm1104_vm13 = vcmp.eq.f32.partialorder %v2419_v22, 0.0 }
 0x1c6   : > { %v907_v10 = vadd.f32 %v873_v61, %v2331_v48  ;;  %v1091_v48 = vand.u32 2147483648, %v2399_v5  ;;  %v2576_v61 = vpop.eup %1831  ;;  %v2586_v43 = vadd.f32 1e-09, %v939_v30  ;;  %vm1123_vm14 = vcmp.eq.f32.partialorder %v2446_v62, inf }
 0x1c7   : > { %v2572_v28 = vadd.f32 1e-09, %v906_v39  ;;  %v2584_v15 = vpop.eup %1833  ;;  %v2601_v39 = vsel %vm1104_vm13, %v1105_v31, %v1103_v38  ;;  %vm1125_vm4 = vcmp.eq.f32.partialorder %v2446_v62, 0.0  ;;  %vm1137_vm6 = vcmp.eq.f32.partialorder %v2463_v50, inf }
 0x1c8   : > { %v2580_v14 = vadd.f32 1e-09, %v907_v10  ;;  %v759_v1 = vpop.f32.mrb[36].mxu0  ;;  %v2596_v54 = vsel %vm1090_vm12, %v1091_v48, %v1089_v25  ;;  %v1122_v48 = vmul.f32 %v2504_v17, %v2446_v62  ;;  %v1136_v17 = vmul.f32 %v2528_v63, %v2463_v50 }
 0x1c9   : > { %1843 = vrsqrt.f32 %v2572_v28  ;;  %v874_v18 = vmul.f32 %v759_v1, %v759_v1  ;;  %v761_v29 = vpop.f32.mrb[37].mxu0  ;;  %v2593_v37 = vpop.eup %1835  ;;  %vm976_vm15 = vcmp.eq.f32.partialorder %v2572_v28, inf  ;;  %vm978_vm1 = vcmp.eq.f32.partialorder %v2572_v28, 0.0 }
 0x1ca   : > { %1845 = vrsqrt.f32 %v2580_v14  ;;  %v875_v58 = vmul.f32 %v761_v29, %v761_v29  ;;  %v763_v24 = vpop.f32.mrb[38].mxu0  ;;  %vm983_vm2 = vcmp.eq.f32.partialorder %v2580_v14, inf  ;;  %vm985_vm3 = vcmp.eq.f32.partialorder %v2580_v14, 0.0 }
 0x1cb   : > { %v908_v40 = vadd.f32 %v874_v18, %v2333_v49  ;;  %v876_v30 = vmul.f32 %v763_v24, %v763_v24  ;;  %v765_v47 = vpop.f32.mrb[39].mxu0  ;;  %1847 = vrsqrt.f32 %v2578_v27  ;;  %v986_v18 = vand.u32 2147483648, %v2580_v14 }
 0x1cc   : > { %v909_v0 = vadd.f32 %v875_v58, %v2337_v52  ;;  %v877_v34 = vmul.f32 %v765_v47, %v765_v47  ;;  %1849 = vrsqrt.f32 %v2586_v43  ;;  %v2615_v52 = vpop.eup %1837  ;;  %v979_v29 = vand.u32 2147483648, %v2572_v28 }
 0x1cd   : > { %v2604_v5 = vadd.f32 1e-09, %v908_v40  ;;  %v910_v12 = vadd.f32 %v876_v30, %v2342_v55  ;;  %v2622_v55 = vpop.eup %1839  ;;  %v1124_v38 = vsel %vm1123_vm14, %v2446_v62, %v1122_v48  ;;  %v1126_v63 = vand.u32 2147483648, %v2446_v62 }
 0x1ce   : > { %v2609_v10 = vadd.f32 1e-09, %v909_v0  ;;  %v911_v22 = vadd.f32 %v877_v34, %v2347_v60  ;;  %v2630_v25 = vpop.eup %1841  ;;  %v1138_v34 = vsel %vm1137_vm6, %v2463_v50, %v1136_v17  ;;  %vm1139_vm11 = vcmp.eq.f32.partialorder %v2463_v50, 0.0 }
 0x1cf   : > { %1851 = vrsqrt.f32 %v2604_v5  ;;  %v2618_v1 = vadd.f32 1e-09, %v910_v12  ;;  %vm990_vm5 = vcmp.eq.f32.partialorder %v2604_v5, inf  ;;  %v993_v31 = vand.u32 2147483648, %v2604_v5 }
 0x1d0   : > { %1853 = vrsqrt.f32 %v2609_v10  ;;  %v2625_v60 = vadd.f32 1e-09, %v911_v22  ;;  %v1000_v24 = vand.u32 2147483648, %v2609_v10  ;;  %vm997_vm7 = vcmp.eq.f32.partialorder %v2609_v10, inf }
 0x1d1   : > { %1855 = vrsqrt.f32 %v2618_v1  ;;  %vm992_vm8 = vcmp.eq.f32.partialorder %v2604_v5, 0.0  ;;  %v1007_v0 = vand.u32 2147483648, %v2618_v1  ;;  %v1140_v12 = vand.u32 2147483648, %v2463_v50 }
 0x1d2   : > { %1857 = vrsqrt.f32 %v2625_v60  ;;  %v1014_v40 = vand.u32 2147483648, %v2625_v60  ;;  %vm999_vm9 = vcmp.eq.f32.partialorder %v2609_v10, 0.0  ;;  %vm1004_vm10 = vcmp.eq.f32.partialorder %v2618_v1, inf }
 0x1d3   : > { %v1844_v58 = vpop.eup %1843  ;;  %v2658_v48 = vsel %vm1125_vm4, %v1126_v63, %v1124_v38  ;;  %vm1011_vm12 = vcmp.eq.f32.partialorder %v2625_v60, inf  ;;  %vm1006_vm13 = vcmp.eq.f32.partialorder %v2618_v1, 0.0  ;;  %vm1116_vm14 = vcmp.eq.f32.partialorder %v2444_v59, inf }
 0x1d4   : > { %v1846_v30 = vpop.eup %1845  ;;  %v975_v47 = vmul.f32 %v1844_v58, %v2572_v28  ;;  %v1115_v58 = vmul.f32 %v2499_v36, %v2444_v59  ;;  %v1129_v62 = vmul.f32 %v2521_v53, %v2457_v7  ;;  %vm1013_vm4 = vcmp.eq.f32.partialorder %v2625_v60, 0.0 }
 0x1d5   : > { %v982_v22 = vmul.f32 %v1846_v30, %v2580_v14  ;;  %v2663_v49 = vpop.eup %1847  ;;  %v2670_v30 = vsel %vm1139_vm11, %v1140_v12, %v1138_v34  ;;  %vm1130_vm6 = vcmp.eq.f32.partialorder %v2457_v7, inf  ;;  %v1133_v38 = vand.u32 2147483648, %v2457_v7 }
 0x1d6   : > { %v977_v17 = vsel %vm976_vm15, %v2572_v28, %v975_v47  ;;  %v2675_v50 = vpop.eup %1849  ;;  %v1117_v63 = vsel %vm1116_vm14, %v2444_v59, %v1115_v58  ;;  %v1119_v47 = vand.u32 2147483648, %v2444_v59  ;;  %vm1118_vm15 = vcmp.eq.f32.partialorder %v2444_v59, 0.0 }
 0x1d7   : > { %v984_v36 = vsel %vm983_vm2, %v2580_v14, %v982_v22  ;;  %v980_v53 = vsel %vm978_vm1, %v979_v29, %v977_v17  ;;  %v1131_v3 = vsel %vm1130_vm6, %v2457_v7, %v1129_v62  ;;  %v1150_v58 = vmul.f32 %v2569_v41, %v2484_v35 }
 0x1d8   : > { %v987_v34 = vsel %vm985_vm3, %v986_v18, %v984_v36  ;;  %v2691_v22 = vsel %vm1118_vm15, %v1119_v47, %v1117_v63  ;;  %vm1132_vm2 = vcmp.eq.f32.partialorder %v2457_v7, 0.0  ;;  %vm1151_vm1 = vcmp.eq.f32.partialorder %v2484_v35, inf }
 0x1d9   : > { %v1852_v12 = vpop.eup %1851  ;;  %v1164_v59 = vmul.f32 %v2584_v15, %v2495_v13  ;;  %v2703_v29 = vsel %vm1132_vm2, %v1133_v38, %v1131_v3  ;;  %vm1153_vm3 = vcmp.eq.f32.partialorder %v2484_v35, 0.0  ;;  %v1154_v17 = vand.u32 2147483648, %v2484_v35 }
 0x1da   : > { %v1854_v57 = vpop.eup %1853  ;;  %v989_v14 = vmul.f32 %v1852_v12, %v2604_v5  ;;  %v1226_v36 = vpack.c.bf16 %v2703_v29, %v2691_v22  ;;  %v1152_v15 = vsel %vm1151_vm1, %v2484_v35, %v1150_v58  ;;  %vm1165_vm11 = vcmp.eq.f32.partialorder %v2495_v13, inf  ;;  %v1790_v22 = vld [vmem:[#allocation7 + $0x10] ss:$8 sps:$4 sm:$0xff]  }
 0x1db   : > { %v1856_v28 = vpop.eup %1855  ;;  %v996_v18 = vmul.f32 %v1854_v57, %v2609_v10  ;;  %v1166_v58 = vsel %vm1165_vm11, %v2495_v13, %v1164_v59  ;;  %v1161_v35 = vand.u32 2147483648, %v2488_v20  ;;  %vm1193_vm14 = vcmp.eq.f32.partialorder %v2537_v2, inf }
 0x1dc   : > { %v1858_v41 = vpop.eup %1857  ;;  %v991_v62 = vsel %vm990_vm5, %v2604_v5, %v989_v14  ;;  %v1003_v7 = vmul.f32 %v1856_v28, %v2618_v1  ;;  %v1168_v28 = vand.u32 2147483648, %v2495_v13  ;;  %vm1167_vm5 = vcmp.eq.f32.partialorder %v2495_v13, 0.0 }
 0x1dd   : > { %v998_v57 = vsel %vm997_vm7, %v2609_v10, %v996_v18  ;;  %v994_v3 = vsel %vm992_vm8, %v993_v31, %v991_v62  ;;  %v1010_v38 = vmul.f32 %v1858_v41, %v2625_v60  ;;  %vm1144_vm7 = vcmp.eq.f32.partialorder %v2470_v46, inf }
 0x1de   : > { %v1001_v63 = vsel %vm999_vm9, %v1000_v24, %v998_v57  ;;  %v1216_v47 = vpack.c.bf16 %v994_v3, %v980_v53  ;;  %v1005_v12 = vsel %vm1004_vm10, %v2618_v1, %v1003_v7  ;;  %v1155_v1 = vsel %vm1153_vm3, %v1154_v17, %v1152_v15 }
 0x1df   : > { %v1217_v14 = vpack.c.bf16 %v1001_v63, %v987_v34  ;;  %v1012_v5 = vsel %vm1011_vm12, %v2625_v60, %v1010_v38  ;;  %v1008_v31 = vsel %vm1006_vm13, %v1007_v0, %v1005_v12  ;;  %v1143_v34 = vmul.f32 %v2533_v33, %v2470_v46 }
 0x1e0   : > { %v1015_v10 = vsel %vm1013_vm4, %v1014_v40, %v1012_v5  ;;  %v1218_v24 = vpack.c.bf16 %v2567_v45, %v1008_v31  ;;  %v1169_v0 = vsel %vm1167_vm5, %v1168_v28, %v1166_v58  ;;  %v1147_v45 = vand.u32 2147483648, %v2470_v46 }
 0x1e1   : > { %1266 = vmatprep.subr.bf16.mxu1 %v1217_v14  ;;  %v1219_v53 = vpack.c.bf16 %v2562_v8, %v1015_v10  ;;  %v1229_v59 = vpack.c.bf16 %v1169_v0, %v1155_v1  ;;  %v1145_v60 = vsel %vm1144_vm7, %v2470_v46, %v1143_v34  ;;  %v1157_v13 = vmul.f32 %v2576_v61, %v2488_v20 }
 0x1e2   : > { %1267 = vmatpush1.bf16.msra.mxu1 %v1216_v47  ;;  %vm1146_vm8 = vcmp.eq.f32.partialorder %v2470_v46, 0.0  ;;  %vm1158_vm9 = vcmp.eq.f32.partialorder %v2488_v20, inf  ;;  %v1178_v33 = vmul.f32 %v2615_v52, %v2523_v4  ;;  %vm1160_vm10 = vcmp.eq.f32.partialorder %v2488_v20, 0.0 }
 0x1e3   : > { %1268 = vmatprep.subr.bf16.mxu1 %v1219_v53  ;;  %v1148_v8 = vsel %vm1146_vm8, %v1147_v45, %v1145_v60  ;;  %v1159_v40 = vsel %vm1158_vm9, %v2488_v20, %v1157_v13  ;;  %vm1179_vm12 = vcmp.eq.f32.partialorder %v2523_v4, inf  ;;  %v1182_v17 = vand.u32 2147483648, %v2523_v4 }
 0x1e4   : > { %v1162_v18 = vsel %vm1160_vm10, %v1161_v35, %v1159_v40  ;;  %v1180_v61 = vsel %vm1179_vm12, %v2523_v4, %v1178_v33  ;;  %v1192_v46 = vmul.f32 %v2630_v25, %v2537_v2  ;;  %vm1181_vm13 = vcmp.eq.f32.partialorder %v2523_v4, 0.0 }
 0x1e5   : > { %v1228_v41 = vpack.c.bf16 %v1162_v18, %v1148_v8  ;;  %v1196_v52 = vand.u32 2147483648, %v2537_v2  ;;  %v1183_v20 = vsel %vm1181_vm13, %v1182_v17, %v1180_v61  ;;  %vm1195_vm4 = vcmp.eq.f32.partialorder %v2537_v2, 0.0 }
 0x1e6   : > { %1269 = vmatpush1.bf16.msra.mxu1 %v1218_v24  ;;  %v1194_v62 = vsel %vm1193_vm14, %v2537_v2, %v1192_v46  ;;  %v1171_v25 = vmul.f32 %v2593_v37, %v2511_v6  ;;  %vm1172_vm15 = vcmp.eq.f32.partialorder %v2511_v6, inf  ;;  %v1175_v4 = vand.u32 2147483648, %v2511_v6 }
 0x1e7   : > { %1270 = vmatprep.subr.bf16.mxu1 %v1221_v32  ;;  %v1197_v7 = vsel %vm1195_vm4, %v1196_v52, %v1194_v62  ;;  %v1185_v15 = vmul.f32 %v2622_v55, %v2535_v23  ;;  %vm1186_vm6 = vcmp.eq.f32.partialorder %v2535_v23, inf  ;;  %v1189_v21 = vand.u32 2147483648, %v2535_v23 }
 0x1e8   : > { %v1231_v57 = vpack.c.bf16 %v1197_v7, %v1183_v20  ;;  %v1173_v19 = vsel %vm1172_vm15, %v2511_v6, %v1171_v25  ;;  %v2889_v32 = vpack.c.bf16 %v2437_v51, %v2427_v56  ;;  %vm1174_vm2 = vcmp.eq.f32.partialorder %v2511_v6, 0.0 }
 0x1e9   : > { %v1187_v2 = vsel %vm1186_vm6, %v2535_v23, %v1185_v15  ;;  %vm1188_vm1 = vcmp.eq.f32.partialorder %v2535_v23, 0.0  ;;  %v2890_v37 = vpack.c.bf16 %v2476_v16, %v2474_v26  ;;  %v1176_v55 = vsel %vm1174_vm2, %v1175_v4, %v1173_v19 }
 0x1ea   : > { %1271 = vmatpush1.bf16.msra.mxu1 %v2889_v32  ;;  %v1190_v3 = vsel %vm1188_vm1, %v1189_v21, %v1187_v2  ;;  %v2891_v63 = vpack.c.bf16 %v2507_v44, %v2501_v42  ;;  %v2892_v56 = vpack.c.bf16 %v2544_v11, %v2542_v9  ;;  %v2893_v51 = vpack.c.bf16 %v2601_v39, %v2596_v54 }
 0x1eb   : > { %1272 = vmatprep.subr.bf16.mxu1 %v2890_v37  ;;  %v1230_v38 = vpack.c.bf16 %v1190_v3, %v1176_v55  ;;  %v2894_v6 = vpack.c.bf16 %v2670_v30, %v2658_v48  ;;  %v1206_v26 = vmul.f32 %v2675_v50, %v2586_v43  ;;  %v1199_v16 = vmul.f32 %v2663_v49, %v2578_v27  ;;  %v1785_v30 = vld [vmem:[#allocation7] ss:$8 sps:$4 sm:$0xff]   ;;  %v1788_v50 = vld [vmem:[#allocation7 + $0x14] ss:$8 sps:$4 sm:$0xff]  }
 0x1ec   : > { %vm1207_vm3 = vcmp.eq.f32.partialorder %v2586_v43, inf  ;;  %vm1200_vm11 = vcmp.eq.f32.partialorder %v2578_v27, inf  ;;  %v1210_v23 = vand.u32 2147483648, %v2586_v43  ;;  %v1203_v9 = vand.u32 2147483648, %v2578_v27 }
 0x1ed   : > { %v1208_v42 = vsel %vm1207_vm3, %v2586_v43, %v1206_v26  ;;  %v1201_v44 = vsel %vm1200_vm11, %v2578_v27, %v1199_v16  ;;  %vm1209_vm5 = vcmp.eq.f32.partialorder %v2586_v43, 0.0  ;;  %vm1202_vm7 = vcmp.eq.f32.partialorder %v2578_v27, 0.0 }
 0x1ee   : > { %1273 = vmatpush1.bf16.msra.mxu1 %v2891_v63  ;;  %v1211_v11 = vsel %vm1209_vm5, %v1210_v23, %v1208_v42  ;;  %v1204_v54 = vsel %vm1202_vm7, %v1203_v9, %v1201_v44  ;;  %vm1259_vm8 = vcmask 1043456  }
 0x1ef   : > { %1274 = vmatprep.subr.bf16.mxu1 %v2892_v56  ;;  %v1233_v39 = vpack.c.bf16 %v1211_v11, %v1211_v11  ;;  %v1232_v49 = vpack.c.bf16 %v1204_v54, %v1204_v54 }
 0x1f1   : > { %v1261_v48 = vsel %vm1259_vm8, %v1232_v49, 0 }
 0x1f2   : > { %1275 = vmatpush1.bf16.msra.mxu1 %v2893_v51 }
 0x1f3   : > { %1276 = vmatprep.subr.bf16.mxu1 %v2894_v6 }
 0x1f6   : > { %1277 = vmatpush1.bf16.msra.mxu1 %v1226_v36 }
 0x1f7   : > { %1278 = vmatprep.subr.bf16.mxu1 %v1229_v59 }
 0x1fa   : > { %1279 = vmatpush1.bf16.msra.mxu1 %v1228_v41 }
 0x1fb   : > { %1280 = vmatprep.subr.bf16.mxu1 %v1231_v57 }
 0x1fe   : > { %1281 = vmatpush1.bf16.msra.mxu1 %v1230_v38 }
 0x1ff   : > { %1557 = vmatprep.subr.msk.bf16.mxu1 %vm1259_vm8, %v1233_v39 }
 0x202   : > { %1283 = vmatpush1.bf16.msra.mxu1 %v1261_v48 }
 0x205   : > { %1299 = vmatmul.mubr.bf16.vlgmr.msra.gmra.mrb[28].mxu1 %v1785_v30 }
 0x206   : > { %1559 = vmatprep.mubr.msk.bf16.mxu1 %vm1252_vm0, %v1788_v50 }
 0x20d   : > { %1309 = vmatmul.mubr.bf16.gmra.mrb[32].mxu1 %v1790_v22 }
 0x2d8   : > { %v1300_v27 = vpop.f32.mrb[28].mxu1 }
 0x2d9   : > { %v1319_v43 = vmax.f32 %v1300_v27, 1e-05  ;;  %v1302_v29 = vpop.f32.mrb[29].mxu1 }
 0x2da   : > { %v1320_v36 = vmax.f32 %v1302_v29, 1e-05  ;;  %v1304_v47 = vpop.f32.mrb[30].mxu1 }
 0x2db   : > { %1859 = vlog2.f32 %v1319_v43  ;;  %v1321_v12 = vmax.f32 %v1304_v47, 1e-05  ;;  %v1306_v58 = vpop.f32.mrb[31].mxu1 }
 0x2dc   : > { %1861 = vlog2.f32 %v1320_v36  ;;  %v1322_v14 = vmax.f32 %v1306_v58, 1e-05 }
 0x2dd   : > { %1863 = vlog2.f32 %v1321_v12 }
 0x2de   : > { %1865 = vlog2.f32 %v1322_v14 }
 0x2e0   : > { %v1310_v5 = vpop.f32.mrb[32].mxu1 }
 0x2e1   : > { %v1323_v31 = vmax.f32 %v1310_v5, 1e-05  ;;  %v1312_v28 = vpop.f32.mrb[33].mxu1 }
 0x2e2   : > { %v1324_v10 = vmax.f32 %v1312_v28, 1e-05  ;;  %v1314_v24 = vpop.f32.mrb[34].mxu1 }
 0x2e3   : > { %1867 = vlog2.f32 %v1323_v31  ;;  %v1325_v34 = vmax.f32 %v1314_v24, 1e-05  ;;  %v1316_v53 = vpop.f32.mrb[35].mxu1 }
 0x2e4   : > { %1869 = vlog2.f32 %v1324_v10  ;;  %v1326_v1 = vmax.f32 %v1316_v53, 1e-05 }
 0x2e5   : > { %v1860_v0 = vpop.eup %1859  ;;  %1871 = vlog2.f32 %v1325_v34 }
 0x2e6   : > { %v1862_v59 = vpop.eup %1861  ;;  %v1328_v60 = vmul.f32 0.6931472, %v1860_v0  ;;  %1873 = vlog2.f32 %v1326_v1 }
 0x2e7   : > { %v1864_v45 = vpop.eup %1863  ;;  %v1330_v13 = vmul.f32 0.6931472, %v1862_v59 }
 0x2e8   : > { %v1866_v35 = vpop.eup %1865  ;;  %1343 = vst [vmem:[%s235_s22] sm:$0xff] %v1328_v60  ;;  %v1332_v33 = vmul.f32 0.6931472, %v1864_v45 }
 0x2e9   : > { %1344 = vst [vmem:[%s235_s22 + $0x8] sm:$0xff] %v1330_v13  ;;  %v1334_v8 = vmul.f32 0.6931472, %v1866_v35 }
 0x2ea   : > { %1345 = vst [vmem:[%s235_s22 + $0x10] sm:$0xff] %v1332_v33 }
 0x2eb   : > { %1346 = vst [vmem:[%s235_s22 + $0x18] sm:$0xff] %v1334_v8 }
 0x2ed   : > { %v1868_v40 = vpop.eup %1867 }
 0x2ee   : > { %v1870_v18 = vpop.eup %1869  ;;  %v1336_v61 = vmul.f32 0.6931472, %v1868_v40 }
 0x2ef   : > { %v1872_v17 = vpop.eup %1871  ;;  %v1338_v46 = vmul.f32 0.6931472, %v1870_v18 }
 0x2f0   : > { %v1874_v41 = vpop.eup %1873  ;;  %1347 = vst [vmem:[%s235_s22 + $0x20] sm:$0xff] %v1336_v61  ;;  %v1340_v52 = vmul.f32 0.6931472, %v1872_v17 }
 0x2f1   : > { %1348 = vst [vmem:[%s235_s22 + $0x28] sm:$0xff] %v1338_v46  ;;  %v1342_v20 = vmul.f32 0.6931472, %v1874_v41 }
 0x2f2   : > { %1349 = vst [vmem:[%s235_s22 + $0x30] sm:$0xff] %v1340_v52 }
 0x2f3   : > { %1350 = vst [vmem:[%s235_s22 + $0x38] sm:$0xff] %v1342_v20 }
 0x2f4   : > { %1974 = shalt.err (!%p1971_p11)
}
 0x2f5   : > { %s1975_s28 = scalar_lea.hbm %s2820_s26, 1024  ;;  %s1979_s6 = scalar_lea.hbm %s2874_s3, 2048 }
 0x2f6   : > { %p1976_p0 = scmp.ne.s32.totalorder %s2820_s26, %s1975_s28  ;;  %p1980_p6 = scmp.lt.u32.totalorder %s2820_s26, %s2874_s3 }
 0x2f7   : > { %p1981_p7 = scmp.lt.u32.totalorder %s1979_s6, %s1975_s28  ;;  %p1983_p8 = scmp.lt.u32.totalorder %s1975_s28, %s2820_s26 }
 0x2f8   : > { %p1977_p4 = pnand %p1976_p0, %p2895_p12 }
 0x2f9   : > { %p1982_p2 = por %p1981_p7, %p1980_p6 }
 0x2fa   : > { %p1978_p13 = pneg %p1977_p4 }
 0x2fb   : > { %p1984_p1 = por %p1983_p8, %p1982_p2 }
 0x2fd   : > { %p1985_p10 = pnand %p1984_p1, %p1978_p13 }
 0x2ff   : > { %1988 = shalt.err (!%p1985_p10)
}
 0x300   : > { %s2055_s22 = smov 256   ;;  %s2056_s24 = smov 16  }
 0x301   : > { %1609 = dma.vmem_to_hbm [thread:$0]  (%p2895_p12), %s2822_s11, 1024, %s2820_s26, %s1352_s15, %s2055_s22, %s2055_s22, %s2056_s24  }
 0x302 PF: > { %s1382_s18 = sand.u32 1, %s2027_s12   ;;  %p2896_p3 = scmp.ne.s32.totalorder %s2882_s23, 0 }
 0x303   : > { %p2897_p5 = scmp.ge.s32.totalorder %s2047_s17, 2  ;;  %s1383_s8 = scalar_lea.sflag [#allocation4], %s1382_s18 }
 0x305   : > { %p1623_p9 = pnand %p2897_p5, %p2896_p3 }
 0x307   : > { %2022 = dma.done.wait (!%p1623_p9), %s1383_s8, 1024  }
 0x308   : > { %2024 = vsyncadd (!%p1623_p9), %s1383_s8, 4294966272  ;;  %s20_s17 = sadd.s32 1, %s2047_s17   ;;  %s2898_s12 = smov %s2031_s13 }
 0x309   : > { %p17_p11 = scmp.ge.s32.totalorder %s20_s17, 4   ;;  %s2899_s13 = smov %s2035_s14 }
 0x30a   : > { %s2900_s14 = smov %s2225_s5  ;;  %s2901_s15 = smov %s2043_s16 }
 0x30b   : > { %s2902_s16 = smov %s2904_s27  ;;  %19 = sbr.rel (!%p17_p11) target bundleno = 7 (0x7), region = 85 }
 0x312   :  { %1388 = vsyncpa [#allocation3], 1 }
 0x313   :  { %1390 = vsyncpa [#allocation3 + $0x1], 1 }
 0x314   :  { %1391 = vsyncpa [#allocation6], 1 }
 0x315   :  { %1392 = vsyncpa [#allocation4], 1 }
 0x316   :  { %1394 = vsyncpa [#allocation4 + $0x1], 1 }

</bundles_post_ra>
